<compile_context>
chip_gen: v7x
topology: tpu7x:2x2x1
jax: 0.10.0
libtpu: 0.0.40
codegen_flags: <defaults>
</compile_context>

<pallas_src>
import functools
import math

import jax
import jax.numpy as jnp
from jax.experimental import pallas as pl
from jax.experimental.pallas import tpu as pltpu

_LANE = 128
_NEG_BIG = -1e30                  # bias for padded classes -> exp underflows to 0
_LOG_PROB_MIN = math.log(1e-4)    # reference clamps prob to [1e-4, 1.0]


def _round_up(x, m):
    return (x + m - 1) // m * m


def focal_loss_kernel(pred_ref, tgt_ref, w1_ref, b1_ref, w2_ref, b2_ref,
                      logits_ref, mask_ref, loss_ref, acc_ref,
                      *, alpha, gamma, use_alpha, size_average, total_b):
    pid = pl.program_id(0)
    last = pl.num_programs(0) - 1

    @pl.when(pid == 0)
    def _init():
        loss_ref[...] = jnp.zeros_like(loss_ref)
        acc_ref[...] = jnp.zeros_like(acc_ref)

    x = pred_ref[...].astype(jnp.float32)                      # (TB, D)

    # h1 = sigmoid(pred @ W1 + b1); padded hidden units are sigmoid(0)=0.5 but
    # hit zero rows of W2, so they contribute nothing downstream.
    h1 = jnp.dot(x, w1_ref[...], preferred_element_type=jnp.float32) + b1_ref[...]
    h1 = jax.nn.sigmoid(h1)
    # TODO(synk): dropout (with_dropout=True, training mode) not implemented;
    # the module's default path has it disabled.

    # z = h1 @ W2 + b2; padded classes carry a -1e30 bias.
    z = jnp.dot(h1, w2_ref[...], preferred_element_type=jnp.float32) + b2_ref[...]

    tb, cp = z.shape
    cls_ids = jax.lax.broadcasted_iota(jnp.int32, (tb, cp), 1)
    tgt = tgt_ref[...]                                          # (TB, 1) int32
    onehot = (cls_ids == tgt).astype(jnp.float32)               # padded cols never match

    # Rows past the true batch size (batch padding) are masked out of the stats.
    row_ids = pid * tb + jax.lax.broadcasted_iota(jnp.int32, (tb, 1), 0)
    valid = (row_ids < total_b).astype(jnp.float32)             # (TB, 1)

    # argmax on pre-softmax logits (monotone => identical, first-index ties).
    z_max = jnp.max(z, axis=1, keepdims=True)                   # (TB, 1)
    pred1 = jnp.min(jnp.where(z == z_max, cls_ids, cp), axis=1, keepdims=True)
    correct = (pred1 == tgt).astype(jnp.float32) * valid
    mask_ref[...] = (pred1 != tgt).astype(jnp.int32)

    # softmax (reuse z_max); approx reciprocal on the EUP + one Newton step.
    ez = jnp.exp(z - z_max)
    denom = jnp.sum(ez, axis=1, keepdims=True)                  # (TB, 1)
    r = pl.reciprocal(denom, approx=True)
    r = r * (2.0 - denom * r)
    logits_ref[...] = ez * r

    # Focal loss on the target class only, via log-softmax of the target logit.
    z_t = jnp.sum(z * onehot, axis=1, keepdims=True)            # (TB, 1) target logit
    log_p = (z_t - z_max) - jnp.log(denom)                      # log softmax, <= 0
    log_p = jnp.maximum(log_p, jnp.float32(_LOG_PROB_MIN))      # prob clamp at 1e-4
    p_t = jnp.exp(log_p)                                        # clamped target prob

    one_minus_p = 1.0 - p_t
    if float(gamma) == int(gamma) and 0 <= int(gamma) <= 8:
        pow_term = jnp.ones_like(one_minus_p)
        for _ in range(int(gamma)):                             # gamma=2 -> 2 vmuls
            pow_term = pow_term * one_minus_p
    else:
        pow_term = jnp.power(one_minus_p, float(gamma))

    per_example = -(pow_term * log_p)
    if use_alpha:
        per_example = alpha * per_example
    per_example = per_example * valid                           # drop padded rows

    loss_ref[...] += jnp.sum(per_example).reshape(1, 1)
    acc_ref[...] += jnp.sum(correct).reshape(1, 1)

    @pl.when(pid == last)
    def _finalize():
        inv_b = jnp.float32(1.0 / total_b)
        acc_ref[...] = acc_ref[...] * inv_b
        if size_average:
            loss_ref[...] = loss_ref[...] * inv_b


def focal_loss_forward(pred, target, w1, b1, w2, b2, *,
                       alpha=0.25, gamma=2, use_alpha=True, size_average=True,
                       tile_b=128):
    assert tile_b % 8 == 0
    B, D = pred.shape
    H = w1.shape[1]
    C = w2.shape[1]

    tb = min(tile_b, _round_up(B, 8))
    b_pad = _round_up(B, tb)
    h_pad = _round_up(H, _LANE)
    c_pad = _round_up(C, _LANE)
    n_tiles = b_pad // tb

    pred_p = jnp.pad(pred.astype(jnp.float32), ((0, b_pad - B), (0, 0)))
    tgt_p = jnp.pad(target.reshape(B, 1).astype(jnp.int32), ((0, b_pad - B), (0, 0)))
    w1_p = jnp.pad(w1.astype(jnp.float32), ((0, 0), (0, h_pad - H)))
    b1_p = jnp.pad(b1.reshape(1, H).astype(jnp.float32), ((0, 0), (0, h_pad - H)))
    w2_p = jnp.pad(w2.astype(jnp.float32), ((0, h_pad - H), (0, c_pad - C)))
    b2_p = jnp.pad(b2.reshape(1, C).astype(jnp.float32), ((0, 0), (0, c_pad - C)),
                   constant_values=_NEG_BIG)

    kernel = functools.partial(
        focal_loss_kernel,
        alpha=float(alpha), gamma=float(gamma),
        use_alpha=bool(use_alpha), size_average=bool(size_average),
        total_b=int(B))

    resident = lambda shape: pl.BlockSpec(shape, lambda i: (0, 0))

    logits_p, mask_i32, loss, acc = pl.pallas_call(
        kernel,
        grid=(n_tiles,),
        out_shape=(
            jax.ShapeDtypeStruct((b_pad, c_pad), jnp.float32),   # softmax probs
            jax.ShapeDtypeStruct((b_pad, 1), jnp.int32),         # misclassified mask
            jax.ShapeDtypeStruct((1, 1), jnp.float32),           # loss
            jax.ShapeDtypeStruct((1, 1), jnp.float32),           # accuracy
        ),
        in_specs=[
            pl.BlockSpec((tb, D), lambda i: (i, 0)),             # pred tile
            pl.BlockSpec((tb, 1), lambda i: (i, 0)),             # target tile
            resident((D, h_pad)),                                # W1 (VMEM-resident)
            resident((1, h_pad)),                                # b1
            resident((h_pad, c_pad)),                            # W2
            resident((1, c_pad)),                                # b2
        ],
        out_specs=(
            pl.BlockSpec((tb, c_pad), lambda i: (i, 0)),
            pl.BlockSpec((tb, 1), lambda i: (i, 0)),
            resident((1, 1)),                                    # loss accumulator
            resident((1, 1)),                                    # acc accumulator
        ),
        compiler_params=pltpu.CompilerParams(
            # batch axis is a reduction axis for the resident loss/acc outputs
            dimension_semantics=("arbitrary",),
            vmem_limit_bytes=32 * 1024 * 1024,
        ),
    )(pred_p, tgt_p, w1_p, b1_p, w2_p, b2_p)

    logits = logits_p[:B, :C]
    mask = mask_i32[:B].astype(jnp.bool_)
    return logits, loss[0, 0], acc[0, 0], mask


def init_linear_params(key, in_features, out_features):
    """Deterministic nn.Linear-style init; W already transposed to (in, out)."""
    kw, kb = jax.random.split(key)
    bound = 1.0 / math.sqrt(in_features)
    w = jax.random.uniform(kw, (in_features, out_features), jnp.float32, -bound, bound)
    b = jax.random.uniform(kb, (1, out_features), jnp.float32, -bound, bound)
    return w, b


if __name__ == "__main__":
    # B=200 exercises 2 batch tiles of 128 plus the padded-row masking path.
    B, INPUT_SIZE, HIDDEN_SIZE, NUM_CLASS = 200, 32, 32, 4

    key = jax.random.PRNGKey(0)
    k_pred, k_tgt, k_l1, k_l2 = jax.random.split(key, 4)

    pred = jax.random.normal(k_pred, (B, INPUT_SIZE), jnp.float32)
    target = jax.random.randint(k_tgt, (B,), 0, NUM_CLASS, jnp.int32)

    w1, b1 = init_linear_params(k_l1, INPUT_SIZE, HIDDEN_SIZE)
    w2, b2 = init_linear_params(k_l2, HIDDEN_SIZE, NUM_CLASS)

    logits, loss, acc, mask = focal_loss_forward(
        pred, target, w1, b1, w2, b2,
        alpha=0.25, gamma=2, use_alpha=True, size_average=True)
    jax.block_until_ready((logits, loss, acc, mask))

    # Plain-JAX reference (mirrors the PyTorch forward; f32 instead of f64 accum).
    h1 = jax.nn.sigmoid(pred @ w1 + b1)
    z = h1 @ w2 + b2
    sm = jax.nn.softmax(z, axis=1)
    prob = jnp.clip(sm, 0.0001, 1.0)
    onehot = jax.nn.one_hot(target, NUM_CLASS, dtype=jnp.float32)
    ref_loss = jnp.mean(jnp.sum(-0.25 * (1 - prob) ** 2 * jnp.log(prob) * onehot, axis=1))
    ref_pred1 = jnp.argmax(z, axis=1)            # softmax is monotone
    ref_acc = jnp.mean((ref_pred1 == target).astype(jnp.float32))
    ref_mask = ref_pred1 != target

    assert logits.shape == (B, NUM_CLASS)
    assert jnp.allclose(logits, sm, atol=2e-5), "logits mismatch"
    assert jnp.allclose(loss, ref_loss, atol=2e-5), "loss mismatch"
    assert jnp.allclose(acc, ref_acc, atol=1e-6), "acc mismatch"
    assert jnp.array_equal(mask[:, 0], ref_mask), "mask mismatch"

    print("KERNEL_OK")
</pallas_src>

<mosaic_0001>
module attributes {stable_mosaic.version = 11 : i64} {
  func.func @focal_loss_kernel(%arg0: i32, %arg1: memref<128x32xf32, #tpu.memory_space<vmem>>, %arg2: memref<128x1xi32, #tpu.memory_space<vmem>>, %arg3: memref<32x128xf32, #tpu.memory_space<vmem>>, %arg4: memref<1x128xf32, #tpu.memory_space<vmem>>, %arg5: memref<128x128xf32, #tpu.memory_space<vmem>>, %arg6: memref<1x128xf32, #tpu.memory_space<vmem>>, %arg7: memref<128x128xf32, #tpu.memory_space<vmem>>, %arg8: memref<128x1xi32, #tpu.memory_space<vmem>>, %arg9: memref<1x1xf32, #tpu.memory_space<vmem>>, %arg10: memref<1x1xf32, #tpu.memory_space<vmem>>) attributes {dimension_semantics = [#tpu.dimension_semantics<arbitrary>], iteration_bounds = array<i64: 2>, scalar_prefetch = 0 : i64, scratch_operands = 0 : i64, tpu.core_type = #tpu.core_type<tc>, window_params = [{transform_indices = @transform_0, window_bounds = array<i64: 128, 32>}, {transform_indices = @transform_1, window_bounds = array<i64: 128, 1>}, {pipeline_mode = #tpu.pipeline_mode<synchronous>, transform_indices = @transform_2, window_bounds = array<i64: 32, 128>}, {pipeline_mode = #tpu.pipeline_mode<synchronous>, transform_indices = @transform_3, window_bounds = array<i64: 1, 128>}, {pipeline_mode = #tpu.pipeline_mode<synchronous>, transform_indices = @transform_4, window_bounds = array<i64: 128, 128>}, {pipeline_mode = #tpu.pipeline_mode<synchronous>, transform_indices = @transform_5, window_bounds = array<i64: 1, 128>}, {transform_indices = @transform_6, window_bounds = array<i64: 128, 128>}, {transform_indices = @transform_7, window_bounds = array<i64: 128, 1>}, {pipeline_mode = #tpu.pipeline_mode<synchronous>, transform_indices = @transform_8, window_bounds = array<i64: 1, 1>}, {pipeline_mode = #tpu.pipeline_mode<synchronous>, transform_indices = @transform_9, window_bounds = array<i64: 1, 1>}]} {
    %c0_i32 = arith.constant 0 : i32
    %0 = arith.cmpi eq, %arg0, %c0_i32 : i32
    %1 = arith.extui %0 : i1 to i32
    %c0_i32_0 = arith.constant 0 : i32
    %2 = arith.cmpi ne, %1, %c0_i32_0 : i32
    scf.if %2 {
      %cst_40 = arith.constant 0.000000e+00 : f32
      %100 = vector.broadcast %cst_40 : f32 to vector<1x1xf32>
      %c0_41 = arith.constant 0 : index
      %c0_42 = arith.constant 0 : index
      %101 = vector.load %arg9[%c0_41, %c0_42] : memref<1x1xf32, #tpu.memory_space<vmem>>, vector<1x1xf32>
      tpu.vector_store %arg9[%c0_41, %c0_42], %100 {strides = array<i32>} : memref<1x1xf32, #tpu.memory_space<vmem>>, vector<1x1xf32>,
      %cst_43 = arith.constant 0.000000e+00 : f32
      %102 = vector.broadcast %cst_43 : f32 to vector<1x1xf32>
      %c0_44 = arith.constant 0 : index
      %c0_45 = arith.constant 0 : index
      %103 = vector.load %arg10[%c0_44, %c0_45] : memref<1x1xf32, #tpu.memory_space<vmem>>, vector<1x1xf32>
      tpu.vector_store %arg10[%c0_44, %c0_45], %102 {strides = array<i32>} : memref<1x1xf32, #tpu.memory_space<vmem>>, vector<1x1xf32>,
    } else {
    }
    %c0 = arith.constant 0 : index
    %c0_1 = arith.constant 0 : index
    %3 = vector.load %arg1[%c0, %c0_1] : memref<128x32xf32, #tpu.memory_space<vmem>>, vector<128x32xf32>
    %c0_2 = arith.constant 0 : index
    %c0_3 = arith.constant 0 : index
    %4 = vector.load %arg3[%c0_2, %c0_3] : memref<32x128xf32, #tpu.memory_space<vmem>>, vector<32x128xf32>
    %cst = arith.constant dense<0.000000e+00> : vector<128x128xf32>
    %5 = tpu.matmul %3, %4, %cst {dimension_numbers = #tpu.dot_dimension_numbers<[1], [0], [0], [1], [0, 0, 1, 1], [], []>} : vector<128x32xf32>, vector<32x128xf32>, vector<128x128xf32> -> vector<128x128xf32>
    %c0_4 = arith.constant 0 : index
    %c0_5 = arith.constant 0 : index
    %6 = vector.load %arg4[%c0_4, %c0_5] : memref<1x128xf32, #tpu.memory_space<vmem>>, vector<1x128xf32>
    %7 = vector.broadcast %6 : vector<1x128xf32> to vector<128x128xf32>
    %8 = arith.addf %5, %7 : vector<128x128xf32>
    %9 = arith.negf %8 : vector<128x128xf32>
    %10 = math.exp %9 : vector<128x128xf32>
    %cst_6 = arith.constant 1.000000e+00 : f32
    %11 = vector.broadcast %cst_6 : f32 to vector<128x128xf32>
    %12 = arith.addf %11, %10 : vector<128x128xf32>
    %13 = arith.divf %11, %12 : vector<128x128xf32>
    %c0_7 = arith.constant 0 : index
    %c0_8 = arith.constant 0 : index
    %14 = vector.load %arg5[%c0_7, %c0_8] : memref<128x128xf32, #tpu.memory_space<vmem>>, vector<128x128xf32>
    %cst_9 = arith.constant dense<0.000000e+00> : vector<128x128xf32>
    %15 = tpu.matmul %13, %14, %cst_9 {dimension_numbers = #tpu.dot_dimension_numbers<[1], [0], [0], [1], [0, 0, 1, 1], [], []>} : vector<128x128xf32>, vector<128x128xf32>, vector<128x128xf32> -> vector<128x128xf32>
    %c0_10 = arith.constant 0 : index
    %c0_11 = arith.constant 0 : index
    %16 = vector.load %arg6[%c0_10, %c0_11] : memref<1x128xf32, #tpu.memory_space<vmem>>, vector<1x128xf32>
    %17 = vector.broadcast %16 : vector<1x128xf32> to vector<128x128xf32>
    %18 = arith.addf %15, %17 : vector<128x128xf32>
    %19 = tpu.iota {dimensions = array<i32: 1>} : vector<128x128xi32>
    %c0_12 = arith.constant 0 : index
    %c0_13 = arith.constant 0 : index
    %20 = vector.load %arg2[%c0_12, %c0_13] : memref<128x1xi32, #tpu.memory_space<vmem>>, vector<128x1xi32>
    %21 = vector.broadcast %20 : vector<128x1xi32> to vector<128x128xi32>
    %22 = arith.cmpi eq, %19, %21 : vector<128x128xi32>
    %23 = arith.extui %22 : vector<128x128xi1> to vector<128x128xi32>
    %24 = arith.sitofp %23 : vector<128x128xi32> to vector<128x128xf32>
    %c128_i32 = arith.constant 128 : i32
    %25 = arith.muli %arg0, %c128_i32 : i32
    %26 = tpu.iota {dimensions = array<i32: 0>} : vector<128x1xi32>
    %27 = vector.broadcast %25 : i32 to vector<128x1xi32>
    %28 = arith.addi %27, %26 : vector<128x1xi32>
    %c200_i32 = arith.constant 200 : i32
    %29 = vector.broadcast %c200_i32 : i32 to vector<128x1xi32>
    %30 = arith.cmpi slt, %28, %29 : vector<128x1xi32>
    %31 = arith.extui %30 : vector<128x1xi1> to vector<128x1xi32>
    %32 = arith.sitofp %31 : vector<128x1xi32> to vector<128x1xf32>
    %cst_14 = arith.constant dense<0xFF800000> : vector<128xf32>
    %33 = vector.multi_reduction <maximumf>, %18, %cst_14 [1] : vector<128x128xf32> to vector<128xf32>
    %34 = vector.shape_cast %33 : vector<128xf32> to vector<128x1xf32>
    %35 = vector.broadcast %34 : vector<128x1xf32> to vector<128x128xf32>
    %36 = arith.cmpf oeq, %18, %35 : vector<128x128xf32>
    %c128_i32_15 = arith.constant 128 : i32
    %37 = vector.broadcast %c128_i32_15 : i32 to vector<128x128xi32>
    %38 = arith.select %36, %19, %37 : vector<128x128xi1>, vector<128x128xi32>
    %cst_16 = arith.constant dense<2147483647> : vector<128xi32>
    %39 = vector.multi_reduction <minsi>, %38, %cst_16 [1] : vector<128x128xi32> to vector<128xi32>
    %40 = vector.shape_cast %39 : vector<128xi32> to vector<128x1xi32>
    %41 = arith.cmpi eq, %40, %20 : vector<128x1xi32>
    %42 = arith.extui %41 : vector<128x1xi1> to vector<128x1xi32>
    %43 = arith.sitofp %42 : vector<128x1xi32> to vector<128x1xf32>
    %44 = arith.mulf %43, %32 : vector<128x1xf32>
    %45 = arith.cmpi ne, %40, %20 : vector<128x1xi32>
    %46 = arith.extui %45 : vector<128x1xi1> to vector<128x1xi32>
    %c0_17 = arith.constant 0 : index
    %c0_18 = arith.constant 0 : index
    %47 = vector.load %arg8[%c0_17, %c0_18] : memref<128x1xi32, #tpu.memory_space<vmem>>, vector<128x1xi32>
    tpu.vector_store %arg8[%c0_17, %c0_18], %46 {strides = array<i32>} : memref<128x1xi32, #tpu.memory_space<vmem>>, vector<128x1xi32>,
    %48 = vector.broadcast %34 : vector<128x1xf32> to vector<128x128xf32>
    %49 = arith.subf %18, %48 : vector<128x128xf32>
    %50 = math.exp %49 : vector<128x128xf32>
    %cst_19 = arith.constant dense<0.000000e+00> : vector<128xf32>
    %51 = vector.multi_reduction <add>, %50, %cst_19 [1] : vector<128x128xf32> to vector<128xf32>
    %52 = vector.shape_cast %51 : vector<128xf32> to vector<128x1xf32>
    %53 = tpu.reciprocal %52 {approx = true} : vector<128x1xf32> -> vector<128x1xf32>
    %54 = arith.mulf %52, %53 : vector<128x1xf32>
    %cst_20 = arith.constant 2.000000e+00 : f32
    %55 = vector.broadcast %cst_20 : f32 to vector<128x1xf32>
    %56 = arith.subf %55, %54 : vector<128x1xf32>
    %57 = arith.mulf %53, %56 : vector<128x1xf32>
    %58 = vector.broadcast %57 : vector<128x1xf32> to vector<128x128xf32>
    %59 = arith.mulf %50, %58 : vector<128x128xf32>
    %c0_21 = arith.constant 0 : index
    %c0_22 = arith.constant 0 : index
    %60 = vector.load %arg7[%c0_21, %c0_22] : memref<128x128xf32, #tpu.memory_space<vmem>>, vector<128x128xf32>
    tpu.vector_store %arg7[%c0_21, %c0_22], %59 {strides = array<i32>} : memref<128x128xf32, #tpu.memory_space<vmem>>, vector<128x128xf32>,
    %61 = arith.mulf %18, %24 : vector<128x128xf32>
    %cst_23 = arith.constant dense<0.000000e+00> : vector<128xf32>
    %62 = vector.multi_reduction <add>, %61, %cst_23 [1] : vector<128x128xf32> to vector<128xf32>
    %63 = vector.shape_cast %62 : vector<128xf32> to vector<128x1xf32>
    %64 = arith.subf %63, %34 : vector<128x1xf32>
    %65 = math.log %52 : vector<128x1xf32>
    %66 = arith.subf %64, %65 : vector<128x1xf32>
    %cst_24 = arith.constant -9.21034049 : f32
    %67 = vector.broadcast %cst_24 : f32 to vector<128x1xf32>
    %68 = arith.maximumf %66, %67 : vector<128x1xf32>
    %69 = math.exp %68 : vector<128x1xf32>
    %cst_25 = arith.constant 1.000000e+00 : f32
    %70 = vector.broadcast %cst_25 : f32 to vector<128x1xf32>
    %71 = arith.subf %70, %69 : vector<128x1xf32>
    %cst_26 = arith.constant 1.000000e+00 : f32
    %72 = vector.broadcast %cst_26 : f32 to vector<128x1xf32>
    %73 = arith.mulf %72, %71 : vector<128x1xf32>
    %74 = arith.mulf %73, %71 : vector<128x1xf32>
    %75 = arith.mulf %74, %68 : vector<128x1xf32>
    %cst_27 = arith.constant 0.000000e+00 : f32
    %76 = vector.broadcast %cst_27 : f32 to vector<128x1xf32>
    %77 = arith.subf %76, %75 : vector<128x1xf32>
    %cst_28 = arith.constant 2.500000e-01 : f32
    %78 = vector.broadcast %cst_28 : f32 to vector<128x1xf32>
    %79 = arith.mulf %78, %77 : vector<128x1xf32>
    %80 = arith.mulf %79, %32 : vector<128x1xf32>
    %c0_29 = arith.constant 0 : index
    %c0_30 = arith.constant 0 : index
    %81 = vector.load %arg9[%c0_29, %c0_30] : memref<1x1xf32, #tpu.memory_space<vmem>>, vector<1x1xf32>
    %82 = vector.shape_cast %80 : vector<128x1xf32> to vector<1x128x1xf32>
    %cst_31 = arith.constant dense<0.000000e+00> : vector<1xf32>
    %83 = vector.multi_reduction <add>, %82, %cst_31 [1, 2] : vector<1x128x1xf32> to vector<1xf32>
    %84 = vector.shape_cast %83 : vector<1xf32> to vector<1x1x1xf32>
    %85 = vector.extract %84[0, 0, 0] : f32 from vector<1x1x1xf32>
    %86 = vector.broadcast %85 : f32 to vector<1x1xf32>
    %87 = arith.addf %81, %86 : vector<1x1xf32>
    %c0_32 = arith.constant 0 : index
    %c0_33 = arith.constant 0 : index
    %88 = vector.load %arg9[%c0_32, %c0_33] : memref<1x1xf32, #tpu.memory_space<vmem>>, vector<1x1xf32>
    tpu.vector_store %arg9[%c0_32, %c0_33], %87 {strides = array<i32>} : memref<1x1xf32, #tpu.memory_space<vmem>>, vector<1x1xf32>,
    %c0_34 = arith.constant 0 : index
    %c0_35 = arith.constant 0 : index
    %89 = vector.load %arg10[%c0_34, %c0_35] : memref<1x1xf32, #tpu.memory_space<vmem>>, vector<1x1xf32>
    %90 = vector.shape_cast %44 : vector<128x1xf32> to vector<1x128x1xf32>
    %cst_36 = arith.constant dense<0.000000e+00> : vector<1xf32>
    %91 = vector.multi_reduction <add>, %90, %cst_36 [1, 2] : vector<1x128x1xf32> to vector<1xf32>
    %92 = vector.shape_cast %91 : vector<1xf32> to vector<1x1x1xf32>
    %93 = vector.extract %92[0, 0, 0] : f32 from vector<1x1x1xf32>
    %94 = vector.broadcast %93 : f32 to vector<1x1xf32>
    %95 = arith.addf %89, %94 : vector<1x1xf32>
    %c0_37 = arith.constant 0 : index
    %c0_38 = arith.constant 0 : index
    %96 = vector.load %arg10[%c0_37, %c0_38] : memref<1x1xf32, #tpu.memory_space<vmem>>, vector<1x1xf32>
    tpu.vector_store %arg10[%c0_37, %c0_38], %95 {strides = array<i32>} : memref<1x1xf32, #tpu.memory_space<vmem>>, vector<1x1xf32>,
    %c1_i32 = arith.constant 1 : i32
    %97 = arith.cmpi eq, %arg0, %c1_i32 : i32
    %98 = arith.extui %97 : i1 to i32
    %c0_i32_39 = arith.constant 0 : i32
    %99 = arith.cmpi ne, %98, %c0_i32_39 : i32
    scf.if %99 {
      %c0_40 = arith.constant 0 : index
      %c0_41 = arith.constant 0 : index
      %100 = vector.load %arg10[%c0_40, %c0_41] : memref<1x1xf32, #tpu.memory_space<vmem>>, vector<1x1xf32>
      %cst_42 = arith.constant 5.000000e-03 : f32
      %101 = vector.broadcast %cst_42 : f32 to vector<1x1xf32>
      %102 = arith.mulf %100, %101 : vector<1x1xf32>
      %c0_43 = arith.constant 0 : index
      %c0_44 = arith.constant 0 : index
      %103 = vector.load %arg10[%c0_43, %c0_44] : memref<1x1xf32, #tpu.memory_space<vmem>>, vector<1x1xf32>
      tpu.vector_store %arg10[%c0_43, %c0_44], %102 {strides = array<i32>} : memref<1x1xf32, #tpu.memory_space<vmem>>, vector<1x1xf32>,
      %c0_45 = arith.constant 0 : index
      %c0_46 = arith.constant 0 : index
      %104 = vector.load %arg9[%c0_45, %c0_46] : memref<1x1xf32, #tpu.memory_space<vmem>>, vector<1x1xf32>
      %cst_47 = arith.constant 5.000000e-03 : f32
      %105 = vector.broadcast %cst_47 : f32 to vector<1x1xf32>
      %106 = arith.mulf %104, %105 : vector<1x1xf32>
      %c0_48 = arith.constant 0 : index
      %c0_49 = arith.constant 0 : index
      %107 = vector.load %arg9[%c0_48, %c0_49] : memref<1x1xf32, #tpu.memory_space<vmem>>, vector<1x1xf32>
      tpu.vector_store %arg9[%c0_48, %c0_49], %106 {strides = array<i32>} : memref<1x1xf32, #tpu.memory_space<vmem>>, vector<1x1xf32>,
    } else {
    }
    return
  }
  func.func @transform_0(%arg0: i32) -> (i32, i32) {
    %c0_i32 = arith.constant 0 : i32
    %c0_i32_0 = arith.constant 0 : i32
    return %arg0, %c0_i32 : i32, i32
  }
  func.func @transform_1(%arg0: i32) -> (i32, i32) {
    %c0_i32 = arith.constant 0 : i32
    %c0_i32_0 = arith.constant 0 : i32
    return %arg0, %c0_i32 : i32, i32
  }
  func.func @transform_2(%arg0: i32) -> (i32, i32) {
    %c0_i32 = arith.constant 0 : i32
    %c0_i32_0 = arith.constant 0 : i32
    %c0_i32_1 = arith.constant 0 : i32
    return %c0_i32, %c0_i32_0 : i32, i32
  }
  func.func @transform_3(%arg0: i32) -> (i32, i32) {
    %c0_i32 = arith.constant 0 : i32
    %c0_i32_0 = arith.constant 0 : i32
    %c0_i32_1 = arith.constant 0 : i32
    return %c0_i32, %c0_i32_0 : i32, i32
  }
  func.func @transform_4(%arg0: i32) -> (i32, i32) {
    %c0_i32 = arith.constant 0 : i32
    %c0_i32_0 = arith.constant 0 : i32
    %c0_i32_1 = arith.constant 0 : i32
    return %c0_i32, %c0_i32_0 : i32, i32
  }
  func.func @transform_5(%arg0: i32) -> (i32, i32) {
    %c0_i32 = arith.constant 0 : i32
    %c0_i32_0 = arith.constant 0 : i32
    %c0_i32_1 = arith.constant 0 : i32
    return %c0_i32, %c0_i32_0 : i32, i32
  }
  func.func @transform_6(%arg0: i32) -> (i32, i32) {
    %c0_i32 = arith.constant 0 : i32
    %c0_i32_0 = arith.constant 0 : i32
    return %arg0, %c0_i32 : i32, i32
  }
  func.func @transform_7(%arg0: i32) -> (i32, i32) {
    %c0_i32 = arith.constant 0 : i32
    %c0_i32_0 = arith.constant 0 : i32
    return %arg0, %c0_i32 : i32, i32
  }
  func.func @transform_8(%arg0: i32) -> (i32, i32) {
    %c0_i32 = arith.constant 0 : i32
    %c0_i32_0 = arith.constant 0 : i32
    %c0_i32_1 = arith.constant 0 : i32
    return %c0_i32, %c0_i32_0 : i32, i32
  }
  func.func @transform_9(%arg0: i32) -> (i32, i32) {
    %c0_i32 = arith.constant 0 : i32
    %c0_i32_0 = arith.constant 0 : i32
    %c0_i32_1 = arith.constant 0 : i32
    return %c0_i32, %c0_i32_0 : i32, i32
  }
}

</mosaic_0001>

<bundles_post_ra>
// kernel: tpu_custom_call.1
= control target key start
LH: loop header
LB: loop body
LE: loop exit
PB: predicated region body
PF: predicated region fallthrough
CT: control target
= control target key end

     0   :  { %15 = vsyncpa [#allocation3], 0  ;;  %s4182_s0 = inlined_call_operand.vmem [shape: f32[256,32], index: 0, kind: input, shape index: {}]   ;;  %s4183_s1 = inlined_call_operand.vmem [shape: s32[256,1], index: 1, kind: input, shape index: {}]   ;;  %s4184_s2 = inlined_call_operand.vmem [shape: f32[32,128], index: 2, kind: input, shape index: {}]   ;;  %s4185_s3 = inlined_call_operand.vmem [shape: f32[1,128], index: 3, kind: input, shape index: {}]   ;;  %s4186_s4 = inlined_call_operand.vmem [shape: f32[128,128], index: 4, kind: input, shape index: {}]   ;;  %s4187_s5 = inlined_call_operand.vmem [shape: f32[1,128], index: 5, kind: input, shape index: {}]   ;;  %s4188_s6 = inlined_call_operand.hbm [shape: f32[256,128], index: 6, kind: output, shape index: {0}]   ;;  %s4189_s7 = inlined_call_operand.vmem [shape: s32[256,1], index: 7, kind: output, shape index: {1}]   ;;  %s4190_s8 = inlined_call_operand.hbm [shape: f32[1,1], index: 8, kind: output, shape index: {2}]   ;;  %s4191_s9 = inlined_call_operand.hbm [shape: f32[1,1], index: 9, kind: output, shape index: {3}]  }
   0x1   :  { %17 = vsyncpa [#allocation3 + $0x1], 0 }
   0x2   :  { %18 = vsyncpa [#allocation5], 0  ;;  %s2903_s30 = smov 0   ;;  %s2905_s10 = smov 0  }
   0x3   :  { %s2907_s11 = smov 0   ;;  %s2909_s12 = smov 0  }
   0x4 LB: > { %4245 = sst [smem:[#allocation9_spill]] %s2839_s11  ;;  %s2924_s13 = sadd.s32 4294967295, %s2843_s12   ;;  %s2843_s12 = sphi %s2909_s12, %s4344_s12   ;;  %s2839_s11 = sphi %s2907_s11, %s4341_s11   ;;  %s2835_s10 = sphi %s2905_s10, %s4343_s10   ;;  %s2831_s30 = sphi %s2903_s30, %s4342_s30  }
   0x5   : > { %s2151_s14 = sadd.s32 4294967294, %s2843_s12   ;;  %s2928_s15 = sadd.s32 1, %s2843_s12  }
   0x6   : > { %s167_s16 = sadd.s32 1, %s2839_s11  ;;  %s164_s17 = ssub.s32 %s2843_s12, %s2928_s15 }
   0x7   : > { %p177_p0 = scmp.ne.s32.totalorder %s2839_s11, %s2835_s10  ;;  %p165_p1 = scmp.eq.s32.totalorder %s164_s17, 0 }
   0x8   : > { %p178_p2 = scmp.eq.s32.totalorder %s2924_s13, 1  ;;  %p183_p3 = scmp.ne.s32.totalorder %s2835_s10, %s2831_s30 }
   0x9   : > { %p184_p4 = scmp.eq.s32.totalorder %s2151_s14, 1  ;;  %p2154_p7 = scmp.ge.s32.totalorder %s2843_s12, 1 }
   0xa   : > { %s2939_s18 = scalar_select %p165_p1, %s2839_s11, %s167_s16  }
   0xb   : > { %p2943_p5 = por %p178_p2, %p177_p0  ;;  %p2947_p6 = por %p184_p4, %p183_p3 }
   0xc   : > { %4246 = sst [smem:[#allocation10_spill]] %s2939_s18  ;;  %p300_p8 = scmp.lt.s32.totalorder %s2843_s12, 3 }
   0xe   : > { %p301_p9 = pnand %p2154_p7, %p300_p8 }
  0x10   : > { %304 = sbr.rel (%p301_p9) target bundleno = 1291 (0x50b), region = 44 }
  0x17   : > { %s332_s21 = sand.u32 1, %s2835_s10   ;;  %s2156_s22 = sshll.u32 %s2924_s13, 4 }
  0x18   : > { %s2155_s23 = sshll.u32 %s332_s21, 7  ;;  %p347_p10 = scmp.lt.s32.totalorder %s2156_s22, 31 }
  0x19   : > { %s2972_s11 = scalar_lea.vmem [#allocation2], %s2155_s23  ;;  %p2162_p11 = scmp.ne.s32.totalorder %s2924_s13, 0 }
  0x1a   : > { %s4346_s22 = smov (!%p347_p10, %s2156_s22), 31  ;;  %vm369_vm0 = vcmask (!%p2162_p11), 0   ;;  %v2845_v0 = vmov (!%p2162_p11), 0.0  }
  0x1b   : > { %s2157_s24 = sshll.u32 %s4346_s22, 3  ;;  %368 = sbr.rel (%p2162_p11) target bundleno = 34 (0x22), region = 48  ;;  %370 = vst.msk [vmem:[#allocation4] sm:$0x1] (!%p2162_p11), %vm369_vm0, %v2845_v0  ;;  %371 = vst.msk [vmem:[#allocation6] sm:$0x1] (!%p2162_p11), %vm369_vm0, %v2845_v0 }
  0x1c   : > { %s2960_s27 = scalar_lea.vmem %s4182_s0, %s2157_s24  ;;  %s2965_s14 = scalar_lea.vmem %s4183_s1, %s2157_s24 }
  0x1d   : > { %s2970_s18 = scalar_lea.vmem %s4189_s7, %s2157_s24 }
  0x22 PF: > { %v388_v1 = vld [vmem:[%s4184_s2] sm:$0xff]  ;;  %v389_v2 = vld [vmem:[%s4184_s2 + $0x8] sm:$0xff]  ;;  %v390_v3 = vld [vmem:[%s4184_s2 + $0x10] sm:$0xff]  ;;  %vm399_vm1 = vcmask 261120   ;;  %v4193_v48 = vmov 0   ;;  %s2213_s24 = sshll.u32 %s2924_s13, 7 }
  0x23   : > { %v2397_v4 = vpack.c.bf16 %v389_v2, %v388_v1  ;;  %v391_v5 = vld [vmem:[%s4184_s2 + $0x18] sm:$0xff]  ;;  %v372_v6 = vld [vmem:[%s2960_s27] sm:$0xff]  ;;  %v690_v9 = vld [vmem:[%s4186_s4 + $0x8] sm:$0xff]  ;;  %2516 = vset.pattern.permute.xlu1 %v4193_v48  ;;  %2515 = vset.pattern.permute.xlu0 %v4193_v48  ;;  %p2246_p12 = scmp.ne.s32.totalorder %s2924_s13, 1 }
  0x24   : > { %v2401_v7 = vpack.c.bf16 %v391_v5, %v390_v3  ;;  %2317 = vmatprep.mubr.msk.f32.mxu0 %vm399_vm1, %v372_v6  ;;  %v689_v8 = vld [vmem:[%s4186_s4] sm:$0xff]  ;;  %v373_v10 = vld [vmem:[%s2960_s27 + $0x8] sm:$0xff]  ;;  %v374_v12 = vld [vmem:[%s2960_s27 + $0x10] sm:$0xff] }
  0x25   : > { %2398 = vmatprep.subr.bf16.mxu0 %v2397_v4  ;;  %v2405_v11 = vpack.c.bf16 %v690_v9, %v689_v8  ;;  %v375_v13 = vld [vmem:[%s2960_s27 + $0x18] sm:$0xff]  ;;  %v376_v14 = vld [vmem:[%s2960_s27 + $0x20] sm:$0xff]  ;;  %v377_v15 = vld [vmem:[%s2960_s27 + $0x28] sm:$0xff] }
  0x26   : > { %2400 = vmatpush3.bf16.msra.mxu0 %v2397_v4  ;;  %v378_v16 = vld [vmem:[%s2960_s27 + $0x30] sm:$0xff]  ;;  %v379_v17 = vld [vmem:[%s2960_s27 + $0x38] sm:$0xff]  ;;  %v380_v18 = vld [vmem:[%s2960_s27 + $0x40] sm:$0xff] }
  0x27   : > { %2402 = vmatprep.subr.bf16.mxu0 %v2401_v7  ;;  %2437 = vmatprep.subr.bf16.mxu1 %v2405_v11  ;;  %v381_v19 = vld [vmem:[%s2960_s27 + $0x48] sm:$0xff]  ;;  %v382_v20 = vld [vmem:[%s2960_s27 + $0x50] sm:$0xff]  ;;  %v383_v21 = vld [vmem:[%s2960_s27 + $0x58] sm:$0xff] }
  0x28   : > { %2445 = vmatpush3.bf16.msra.mxu1 %v2405_v11  ;;  %v384_v22 = vld [vmem:[%s2960_s27 + $0x60] sm:$0xff]  ;;  %v385_v23 = vld [vmem:[%s2960_s27 + $0x68] sm:$0xff]  ;;  %v386_v24 = vld [vmem:[%s2960_s27 + $0x70] sm:$0xff] }
  0x29   : > { %v387_v25 = vld [vmem:[%s2960_s27 + $0x78] sm:$0xff]  ;;  %v691_v26 = vld [vmem:[%s4186_s4 + $0x10] sm:$0xff]  ;;  %v693_v29 = vld [vmem:[%s4186_s4 + $0x20] sm:$0xff] }
  0x2a   : > { %2404 = vmatpush3.bf16.msra.mxu0 %v2401_v7  ;;  %v692_v27 = vld [vmem:[%s4186_s4 + $0x18] sm:$0xff]  ;;  %v694_v30 = vld [vmem:[%s4186_s4 + $0x28] sm:$0xff]  ;;  %v695_v32 = vld [vmem:[%s4186_s4 + $0x30] sm:$0xff] }
  0x2b   : > { %2406 = vmatprep.subr.bf16.mxu0 %v2405_v11  ;;  %v2409_v28 = vpack.c.bf16 %v692_v27, %v691_v26  ;;  %v2413_v31 = vpack.c.bf16 %v694_v30, %v693_v29  ;;  %v696_v33 = vld [vmem:[%s4186_s4 + $0x38] sm:$0xff]  ;;  %v697_v35 = vld [vmem:[%s4186_s4 + $0x40] sm:$0xff]  ;;  %v698_v36 = vld [vmem:[%s4186_s4 + $0x48] sm:$0xff] }
  0x2c   : > { %v2417_v34 = vpack.c.bf16 %v696_v33, %v695_v32  ;;  %v2421_v37 = vpack.c.bf16 %v698_v36, %v697_v35  ;;  %v699_v38 = vld [vmem:[%s4186_s4 + $0x50] sm:$0xff]  ;;  %v700_v39 = vld [vmem:[%s4186_s4 + $0x58] sm:$0xff]  ;;  %v701_v41 = vld [vmem:[%s4186_s4 + $0x60] sm:$0xff] }
  0x2d   : > { %2318 = vmatmul.mubr.msk.f32.vlgmr.msra.gmra.mrb[0].mxu0 %vm399_vm1, %v373_v10  ;;  %2438 = vmatprep.subr.bf16.mxu1 %v2409_v28  ;;  %v2425_v40 = vpack.c.bf16 %v700_v39, %v699_v38  ;;  %v702_v42 = vld [vmem:[%s4186_s4 + $0x68] sm:$0xff]  ;;  %v703_v44 = vld [vmem:[%s4186_s4 + $0x70] sm:$0xff]  ;;  %v704_v45 = vld [vmem:[%s4186_s4 + $0x78] sm:$0xff] }
  0x2e   : > { %2320 = vmatprep.mubr.msk.f32.mxu0 %vm399_vm1, %v374_v12  ;;  %2408 = vmatpush3.bf16.msra.mxu0 %v2405_v11  ;;  %v2429_v43 = vpack.c.bf16 %v702_v42, %v701_v41  ;;  %v2433_v46 = vpack.c.bf16 %v704_v45, %v703_v44  ;;  %v860_v47 = vld [vmem:[%s2965_s14 + $0x8] sm:$0xff]  ;;  %v859_v49 = vld [vmem:[%s2965_s14] sm:$0xff]  ;;  %v861_v50 = vld [vmem:[%s2965_s14 + $0x10] sm:$0xff] }
  0x2f   : > { %2410 = vmatprep.subr.bf16.mxu0 %v2409_v28  ;;  %2446 = vmatpush3.bf16.msra.mxu1 %v2409_v28  ;;  %v868_v51 = vld [vmem:[%s2965_s14 + $0x48] sm:$0xff]  ;;  %v862_v52 = vld [vmem:[%s2965_s14 + $0x18] sm:$0xff]  ;;  %v863_v54 = vld [vmem:[%s2965_s14 + $0x20] sm:$0xff] }
  0x30   : > { %2439 = vmatprep.subr.bf16.mxu1 %v2413_v31  ;;  %879 = vperm.xlu1 %2516, %v860_v47   ;;  %v870_v53 = vld [vmem:[%s2965_s14 + $0x58] sm:$0xff]  ;;  %v864_v55 = vld [vmem:[%s2965_s14 + $0x28] sm:$0xff]  ;;  %v865_v56 = vld [vmem:[%s2965_s14 + $0x30] sm:$0xff] }
  0x31   : > { %2321 = vmatmul.mubr.msk.f32.gmra.mrb[2].mxu0 %vm399_vm1, %v375_v13  ;;  %876 = vperm.xlu0 %2515, %v859_v49   ;;  %v866_v57 = vld [vmem:[%s2965_s14 + $0x38] sm:$0xff]  ;;  %v867_v58 = vld [vmem:[%s2965_s14 + $0x40] sm:$0xff]  ;;  %v869_v59 = vld [vmem:[%s2965_s14 + $0x50] sm:$0xff] }
  0x32   : > { %2323 = vmatprep.mubr.msk.f32.mxu0 %vm399_vm1, %v376_v14  ;;  %2412 = vmatpush3.bf16.msra.mxu0 %v2409_v28  ;;  %v871_v60 = vld [vmem:[%s2965_s14 + $0x60] sm:$0xff]  ;;  %v872_v61 = vld [vmem:[%s2965_s14 + $0x68] sm:$0xff] }
  0x33   : > { %2414 = vmatprep.subr.bf16.mxu0 %v2413_v31  ;;  %2447 = vmatpush3.bf16.msra.mxu1 %v2413_v31  ;;  %v3086_v62 = vld [vmem:[%s4185_s3] ss:$0 sm:$0xff] }
  0x34   : > { %2440 = vmatprep.subr.bf16.mxu1 %v2417_v34  ;;  %882 = vperm.xlu1 %2516, %v861_v50  }
  0x35   : > { %2324 = vmatmul.mubr.msk.f32.gmra.mrb[4].mxu0 %vm399_vm1, %v377_v15  ;;  %903 = vperm.xlu0 %2515, %v868_v51  }
  0x36   : > { %2326 = vmatprep.mubr.msk.f32.mxu0 %vm399_vm1, %v378_v16  ;;  %2416 = vmatpush3.bf16.msra.mxu0 %v2413_v31 }
  0x37   : > { %2418 = vmatprep.subr.bf16.mxu0 %v2417_v34  ;;  %2448 = vmatpush3.bf16.msra.mxu1 %v2417_v34 }
  0x38   : > { %2441 = vmatprep.subr.bf16.mxu1 %v2421_v37  ;;  %885 = vperm.xlu1 %2516, %v862_v52  }
  0x39   : > { %2327 = vmatmul.mubr.msk.f32.gmra.mrb[6].mxu0 %vm399_vm1, %v379_v17  ;;  %909 = vperm.xlu0 %2515, %v870_v53  }
  0x3a   : > { %2329 = vmatprep.mubr.msk.f32.mxu0 %vm399_vm1, %v380_v18  ;;  %2420 = vmatpush3.bf16.msra.mxu0 %v2417_v34 }
  0x3b   : > { %2422 = vmatprep.subr.bf16.mxu0 %v2421_v37  ;;  %2449 = vmatpush3.bf16.msra.mxu1 %v2421_v37 }
  0x3c   : > { %2442 = vmatprep.subr.bf16.mxu1 %v2425_v40  ;;  %888 = vperm.xlu1 %2516, %v863_v54  }
  0x3d   : > { %2330 = vmatmul.mubr.msk.f32.gmra.mrb[8].mxu0 %vm399_vm1, %v381_v19 }
  0x3e   : > { %2332 = vmatprep.mubr.msk.f32.mxu0 %vm399_vm1, %v382_v20  ;;  %2424 = vmatpush3.bf16.msra.mxu0 %v2421_v37 }
  0x3f   : > { %2426 = vmatprep.subr.bf16.mxu0 %v2425_v40  ;;  %2450 = vmatpush3.bf16.msra.mxu1 %v2425_v40 }
  0x40   : > { %2443 = vmatprep.subr.bf16.mxu1 %v2429_v43  ;;  %891 = vperm.xlu1 %2516, %v864_v55  }
  0x41   : > { %2333 = vmatmul.mubr.msk.f32.gmra.mrb[10].mxu0 %vm399_vm1, %v383_v21 }
  0x42   : > { %2335 = vmatprep.mubr.msk.f32.mxu0 %vm399_vm1, %v384_v22  ;;  %2428 = vmatpush3.bf16.msra.mxu0 %v2425_v40 }
  0x43   : > { %2430 = vmatprep.subr.bf16.mxu0 %v2429_v43  ;;  %2451 = vmatpush3.bf16.msra.mxu1 %v2429_v43 }
  0x44   : > { %2444 = vmatprep.subr.bf16.mxu1 %v2433_v46  ;;  %894 = vperm.xlu1 %2516, %v865_v56  }
  0x45   : > { %2336 = vmatmul.mubr.msk.f32.gmra.mrb[12].mxu0 %vm399_vm1, %v385_v23 }
  0x46   : > { %2338 = vmatprep.mubr.msk.f32.mxu0 %vm399_vm1, %v386_v24  ;;  %2432 = vmatpush3.bf16.msra.mxu0 %v2429_v43 }
  0x47   : > { %2434 = vmatprep.subr.bf16.mxu0 %v2433_v46  ;;  %2452 = vmatpush3.bf16.msra.mxu1 %v2433_v46 }
  0x48   : > { %897 = vperm.xlu1 %2516, %v866_v57  }
  0x49   : > { %2339 = vmatmul.mubr.msk.f32.gmra.mrb[14].mxu0 %vm399_vm1, %v387_v25 }
  0x4a   : > { %2436 = vmatpush3.bf16.msra.mxu0 %v2433_v46 }
  0x4c   : > { %900 = vperm.xlu1 %2516, %v867_v58  }
  0x50   : > { %906 = vperm.xlu1 %2516, %v869_v59  }
  0x54   : > { %912 = vperm.xlu1 %2516, %v871_v60  }
  0x58   : > { %915 = vperm.xlu1 %2516, %v872_v61  }
 0x100   : > { %v2319_v63 = vpop.f32.mrb[0].mxu0 }
 0x101   : > { %v520_v0 = vadd.f32 %v2319_v63, %v3086_v62  ;;  %v514_v1 = vpop.f32.mrb[1].mxu0 }
 0x102   : > { %v515_v2 = vadd.f32 %v3086_v62, %v514_v1 }
 0x103   : > { %v2181_v3 = vmul.f32 -1.442695, %v520_v0 }
 0x104   : > { %v2180_v4 = vmul.f32 -1.442695, %v515_v2  ;;  %v2322_v5 = vpop.f32.mrb[2].mxu0 }
 0x105   : > { %2517 = vpow2.f32 %v2181_v3  ;;  %v530_v6 = vadd.f32 %v2322_v5, %v3086_v62  ;;  %v524_v7 = vpop.f32.mrb[3].mxu0 }
 0x106   : > { %2519 = vpow2.f32 %v2180_v4  ;;  %v525_v8 = vadd.f32 %v3086_v62, %v524_v7 }
 0x107   : > { %v2183_v9 = vmul.f32 -1.442695, %v530_v6 }
 0x108   : > { %v2182_v10 = vmul.f32 -1.442695, %v525_v8  ;;  %v2325_v11 = vpop.f32.mrb[4].mxu0 }
 0x109   : > { %2521 = vpow2.f32 %v2183_v9  ;;  %v540_v12 = vadd.f32 %v2325_v11, %v3086_v62  ;;  %v534_v13 = vpop.f32.mrb[5].mxu0 }
 0x10a   : > { %2523 = vpow2.f32 %v2182_v10  ;;  %v535_v14 = vadd.f32 %v3086_v62, %v534_v13 }
 0x10b   : > { %v2185_v15 = vmul.f32 -1.442695, %v540_v12 }
 0x10c   : > { %v2184_v16 = vmul.f32 -1.442695, %v535_v14  ;;  %v2328_v17 = vpop.f32.mrb[6].mxu0 }
 0x10d   : > { %2525 = vpow2.f32 %v2185_v15  ;;  %v550_v18 = vadd.f32 %v2328_v17, %v3086_v62  ;;  %v544_v19 = vpop.f32.mrb[7].mxu0 }
 0x10e   : > { %2527 = vpow2.f32 %v2184_v16  ;;  %v545_v20 = vadd.f32 %v3086_v62, %v544_v19 }
 0x10f   : > { %v2518_v21 = vpop.eup %2517  ;;  %v2187_v22 = vmul.f32 -1.442695, %v550_v18 }
 0x110   : > { %v2520_v23 = vpop.eup %2519  ;;  %v642_v24 = vadd.f32 1.0, %v2518_v21  ;;  %v2186_v25 = vmul.f32 -1.442695, %v545_v20  ;;  %v2331_v26 = vpop.f32.mrb[8].mxu0 }
 0x111   : > { %v641_v27 = vadd.f32 1.0, %v2520_v23  ;;  %2529 = vpow2.f32 %v2187_v22  ;;  %v560_v28 = vadd.f32 %v2331_v26, %v3086_v62  ;;  %v554_v29 = vpop.f32.mrb[9].mxu0 }
 0x112   : > { %2531 = vrcp.f32 %v642_v24  ;;  %v555_v30 = vadd.f32 %v3086_v62, %v554_v29 }
 0x113   : > { %v2522_v31 = vpop.eup %2521  ;;  %2533 = vrcp.f32 %v641_v27  ;;  %v2189_v32 = vmul.f32 -1.442695, %v560_v28 }
 0x114   : > { %v2524_v33 = vpop.eup %2523  ;;  %v644_v34 = vadd.f32 1.0, %v2522_v31  ;;  %2535 = vpow2.f32 %v2186_v25  ;;  %v2188_v35 = vmul.f32 -1.442695, %v555_v30  ;;  %v2334_v36 = vpop.f32.mrb[10].mxu0 }
 0x115   : > { %v643_v37 = vadd.f32 1.0, %v2524_v33  ;;  %2537 = vpow2.f32 %v2189_v32  ;;  %v570_v38 = vadd.f32 %v2334_v36, %v3086_v62  ;;  %v564_v39 = vpop.f32.mrb[11].mxu0  ;;  %v2196_v32 = vld [vmem:[%s4187_s5] ss:$0 sm:$0xff] }
 0x116   : > { %2539 = vrcp.f32 %v644_v34  ;;  %v565_v40 = vadd.f32 %v3086_v62, %v564_v39 }
 0x117   : > { %v2526_v41 = vpop.eup %2525  ;;  %2541 = vrcp.f32 %v643_v37  ;;  %v2191_v42 = vmul.f32 -1.442695, %v570_v38 }
 0x118   : > { %v2528_v43 = vpop.eup %2527  ;;  %v646_v44 = vadd.f32 1.0, %v2526_v41  ;;  %2543 = vpow2.f32 %v2188_v35  ;;  %v2190_v45 = vmul.f32 -1.442695, %v565_v40  ;;  %v2337_v46 = vpop.f32.mrb[12].mxu0 }
 0x119   : > { %v645_v47 = vadd.f32 1.0, %v2528_v43  ;;  %2545 = vpow2.f32 %v2191_v42  ;;  %v580_v49 = vadd.f32 %v2337_v46, %v3086_v62  ;;  %v574_v50 = vpop.f32.mrb[13].mxu0 }
 0x11a   : > { %2547 = vrcp.f32 %v646_v44  ;;  %v575_v51 = vadd.f32 %v3086_v62, %v574_v50 }
 0x11b   : > { %v2530_v52 = vpop.eup %2529  ;;  %2549 = vrcp.f32 %v645_v47  ;;  %v2193_v53 = vmul.f32 -1.442695, %v580_v49 }
 0x11c   : > { %v2532_v54 = vpop.eup %2531  ;;  %2551 = vpow2.f32 %v2190_v45  ;;  %v2192_v55 = vmul.f32 -1.442695, %v575_v51  ;;  %v2340_v56 = vpop.f32.mrb[14].mxu0  ;;  %v648_v58 = vadd.f32 1.0, %v2530_v52 }
 0x11d   : > { %v2534_v57 = vpop.eup %2533  ;;  %v590_v59 = vadd.f32 %v2340_v56, %v3086_v62  ;;  %v584_v60 = vpop.f32.mrb[15].mxu0  ;;  %2553 = vpow2.f32 %v2193_v53 }
 0x11e   : > { %v2536_v61 = vpop.eup %2535  ;;  %v585_v63 = vadd.f32 %v3086_v62, %v584_v60  ;;  %2373 = vmatprep.mubr.f32.mxu0 %v2534_v57  ;;  %2555 = vpow2.f32 %v2192_v55 }
 0x11f   : > { %v2538_v0 = vpop.eup %2537  ;;  %v2195_v1 = vmul.f32 -1.442695, %v590_v59  ;;  %2374 = vmatmul.mubr.f32.vlgmr.msra.gmra.mrb[16].mxu0 %v2532_v54  ;;  %v647_v4 = vadd.f32 1.0, %v2536_v61  ;;  %2557 = vrcp.f32 %v648_v58 }
 0x120   : > { %v2540_v2 = vpop.eup %2539  ;;  %v2194_v3 = vmul.f32 -1.442695, %v585_v63  ;;  %v650_v8 = vadd.f32 1.0, %v2538_v0 }
 0x121   : > { %v2542_v5 = vpop.eup %2541  ;;  %2559 = vpow2.f32 %v2195_v1 }
 0x122   : > { %v2544_v6 = vpop.eup %2543  ;;  %2376 = vmatprep.mubr.f32.mxu0 %v2542_v5  ;;  %2561 = vpow2.f32 %v2194_v3  ;;  %v874_v3 = vld [vmem:[%s2965_s14 + $0x78] sm:$0xff]  ;;  %v4195_v5 = vlaneseq }
 0x123   : > { %v2546_v7 = vpop.eup %2545  ;;  %v649_v9 = vadd.f32 1.0, %v2544_v6  ;;  %2377 = vmatmul.mubr.f32.gmra.mrb[18].mxu0 %v2540_v2  ;;  %2563 = vrcp.f32 %v647_v4  ;;  %v873_v4 = vld [vmem:[%s2965_s14 + $0x70] sm:$0xff] }
 0x124   : > { %v2548_v10 = vpop.eup %2547  ;;  %v652_v12 = vadd.f32 1.0, %v2546_v7  ;;  %v3158_v6 = vand.u32 127, %v4195_v5  ;;  %v877_v7 = vpop.permute.xlu0 %876 }
 0x125   : > { %v2550_v62 = vpop.eup %2549  ;;  %2565 = vrcp.f32 %v649_v9  ;;  %v4196_v9 = vmov 0.0  }
 0x126   : > { %v2552_v11 = vpop.eup %2551  ;;  %2379 = vmatprep.mubr.f32.mxu0 %v2550_v62  ;;  %2567 = vrcp.f32 %v650_v8  ;;  %v880_v8 = vpop.permute.xlu1 %879  ;;  %vm923_vm2 = vcmp.eq.s32.totalorder %v3158_v6, %v877_v7 }
 0x127   : > { %v651_v13 = vadd.f32 1.0, %v2552_v11  ;;  %2380 = vmatmul.mubr.f32.gmra.mrb[20].mxu0 %v2548_v10  ;;  %v2554_v14 = vpop.eup %2553  ;;  %vm924_vm3 = vcmp.eq.s32.totalorder %v3158_v6, %v880_v8  ;;  %v2197_v10 = vsel %vm923_vm2, 1.0, %v4196_v9 }
 0x128   : > { %v2556_v15 = vpop.eup %2555  ;;  %v654_v18 = vadd.f32 1.0, %v2554_v14  ;;  %v2198_v62 = vsel %vm924_vm3, 1.0, %v4196_v9 }
 0x129   : > { %2569 = vrcp.f32 %v651_v13  ;;  %v653_v16 = vadd.f32 1.0, %v2556_v15  ;;  %v2558_v17 = vpop.eup %2557 }
 0x12a   : > { %2571 = vrcp.f32 %v652_v12  ;;  %v3166_v13 = vpop.permute.xlu1 %882 }
 0x12b   : > { %v2560_v19 = vpop.eup %2559  ;;  %2573 = vrcp.f32 %v653_v16 }
 0x12c   : > { %v2562_v20 = vpop.eup %2561  ;;  %2575 = vrcp.f32 %v654_v18  ;;  %v656_v24 = vadd.f32 1.0, %v2560_v19 }
 0x12d   : > { %v2564_v21 = vpop.eup %2563  ;;  %v655_v22 = vadd.f32 1.0, %v2562_v20 }
 0x12e   : > { %2382 = vmatprep.mubr.f32.mxu1 %v2564_v21  ;;  %v3168_v14 = vpop.permute.xlu1 %885  ;;  %v3182_v21 = vpop.permute.xlu0 %903 }
 0x12f   : > { %v2566_v23 = vpop.eup %2565  ;;  %2577 = vrcp.f32 %v655_v22  ;;  %2383 = vmatmul.mubr.f32.vlgmr.msra.gmra.mrb[0].mxu1 %v2558_v17 }
 0x130   : > { %v2568_v25 = vpop.eup %2567  ;;  %2385 = vmatprep.mubr.f32.mxu1 %v2566_v23  ;;  %2579 = vrcp.f32 %v656_v24 }
 0x132   : > { %v3170_v15 = vpop.permute.xlu1 %888  ;;  %v3186_v23 = vpop.permute.xlu0 %909 }
 0x133   : > { %v2570_v26 = vpop.eup %2569  ;;  %2386 = vmatmul.mubr.f32.gmra.mrb[2].mxu1 %v2568_v25 }
 0x134   : > { %v2572_v27 = vpop.eup %2571  ;;  %2388 = vmatprep.mubr.f32.mxu1 %v2570_v26 }
 0x135   : > { %v2574_v28 = vpop.eup %2573 }
 0x136   : > { %v2576_v29 = vpop.eup %2575  ;;  %v3172_v16 = vpop.permute.xlu1 %891 }
 0x137   : > { %2389 = vmatmul.mubr.f32.gmra.mrb[4].mxu1 %v2572_v27 }
 0x138   : > { %2391 = vmatprep.mubr.f32.mxu1 %v2574_v28 }
 0x139   : > { %v2578_v30 = vpop.eup %2577 }
 0x13a   : > { %v2580_v31 = vpop.eup %2579  ;;  %v3174_v17 = vpop.permute.xlu1 %894 }
 0x13b   : > { %2392 = vmatmul.mubr.f32.gmra.mrb[6].mxu1 %v2576_v29 }
 0x13c   : > { %2394 = vmatprep.mubr.f32.mxu1 %v2578_v30 }
 0x13e   : > { %v3176_v18 = vpop.permute.xlu1 %897 }
 0x13f   : > { %2395 = vmatmul.mubr.f32.gmra.mrb[8].mxu1 %v2580_v31 }
 0x142   : > { %v3178_v19 = vpop.permute.xlu1 %900 }
 0x146   : > { %v3180_v20 = vpop.permute.xlu1 %906 }
 0x14a   : > { %v3184_v22 = vpop.permute.xlu1 %912 }
 0x14e   : > { %v3188_v24 = vpop.permute.xlu1 %915 }
 0x1f2   : > { %v2375_v33 = vpop.f32.mrb[16].mxu0 }
 0x1f3   : > { %v3107_v34 = vadd.f32 %v2375_v33, %v2196_v32  ;;  %v778_v35 = vpop.f32.mrb[17].mxu0 }
 0x1f4   : > { %v3110_v37 = vadd.f32 %v2196_v32, %v778_v35 }
 0x1f5   : > { %1056 = vmax.xlane.f32.xlu0 %v3107_v34  ;;  %v1632_v12 = vmul.f32 %v2198_v62, %v3107_v34 }
 0x1f6   : > { %v2378_v36 = vpop.f32.mrb[18].mxu0  ;;  %v1631_v11 = vmul.f32 %v2197_v10, %v3110_v37 }
 0x1f7   : > { %v3112_v38 = vadd.f32 %v2378_v36, %v2196_v32  ;;  %v788_v39 = vpop.f32.mrb[19].mxu0 }
 0x1f8   : > { %v3116_v41 = vadd.f32 %v2196_v32, %v788_v39 }
 0x1f9   : > { %1060 = vmax.xlane.f32.xlu1 %v3112_v38  ;;  %1054 = vmax.xlane.f32.xlu0 %v3110_v37 }
 0x1fa   : > { %v2381_v40 = vpop.f32.mrb[20].mxu0 }
 0x1fb   : > { %v798_v42 = vpop.f32.mrb[21].mxu0  ;;  %v3122_v44 = vadd.f32 %v2381_v40, %v2196_v32 }
 0x1fc   : > { %v3118_v43 = vadd.f32 %v2196_v32, %v798_v42 }
 0x1fd   : > { %1058 = vmax.xlane.f32.xlu1 %v3116_v41 }
 0x1fe   : > { %1062 = vmax.xlane.f32.xlu0 %v3118_v43 }
 0x201   : > { %1064 = vmax.xlane.f32.xlu1 %v3122_v44 }
 0x202   : > { %v2384_v45 = vpop.f32.mrb[0].mxu1 }
 0x203   : > { %v3125_v46 = vadd.f32 %v2384_v45, %v2196_v32  ;;  %v808_v47 = vpop.f32.mrb[1].mxu1 }
 0x204   : > { %v3127_v49 = vadd.f32 %v2196_v32, %v808_v47 }
 0x205   : > { %1068 = vmax.xlane.f32.xlu1 %v3125_v46 }
 0x206   : > { %v2387_v50 = vpop.f32.mrb[2].mxu1  ;;  %1066 = vmax.xlane.f32.xlu0 %v3127_v49 }
 0x207   : > { %v3131_v51 = vadd.f32 %v2387_v50, %v2196_v32  ;;  %v818_v52 = vpop.f32.mrb[3].mxu1 }
 0x208   : > { %v3133_v53 = vadd.f32 %v2196_v32, %v818_v52 }
 0x209   : > { %1072 = vmax.xlane.f32.xlu1 %v3131_v51 }
 0x20a   : > { %v2390_v54 = vpop.f32.mrb[4].mxu1  ;;  %1070 = vmax.xlane.f32.xlu0 %v3133_v53 }
 0x20b   : > { %v3137_v55 = vadd.f32 %v2390_v54, %v2196_v32  ;;  %v828_v56 = vpop.f32.mrb[5].mxu1 }
 0x20c   : > { %v3139_v57 = vadd.f32 %v2196_v32, %v828_v56 }
 0x20d   : > { %1076 = vmax.xlane.f32.xlu1 %v3137_v55 }
 0x20e   : > { %v2393_v58 = vpop.f32.mrb[6].mxu1  ;;  %1074 = vmax.xlane.f32.xlu0 %v3139_v57 }
 0x20f   : > { %v3143_v59 = vadd.f32 %v2393_v58, %v2196_v32  ;;  %v838_v60 = vpop.f32.mrb[7].mxu1 }
 0x210   : > { %v3145_v61 = vadd.f32 %v2196_v32, %v838_v60 }
 0x211   : > { %1080 = vmax.xlane.f32.xlu1 %v3143_v59 }
 0x212   : > { %v2396_v63 = vpop.f32.mrb[8].mxu1  ;;  %1078 = vmax.xlane.f32.xlu0 %v3145_v61 }
 0x213   : > { %v3149_v0 = vadd.f32 %v2396_v63, %v2196_v32  ;;  %v848_v1 = vpop.f32.mrb[9].mxu1 }
 0x214   : > { %v3151_v2 = vadd.f32 %v2196_v32, %v848_v1 }
 0x215   : > { %1084 = vmax.xlane.f32.xlu1 %v3149_v0 }
 0x216   : > { %1082 = vmax.xlane.f32.xlu0 %v3151_v2 }
 0x226   : > { %921 = vperm.xlu1 %2516, %v874_v3  }
 0x22c   : > { %918 = vperm.xlu0 %2515, %v873_v4  }
 0x24a   : > { %1647 = vadd.xlane.f32.xlu1 %v1631_v11 }
 0x24b   : > { %1649 = vadd.xlane.f32.xlu0 %v1632_v12 }
 0x282   : > { %v3190_v25 = vpop.xlane.xlu0 %1056 }
 0x283   : > { %4249 = vst [vmem:[#allocation11_spill] sm:$0xff] %v3190_v25  ;;  %vm1087_vm4 = vcmp.eq.f32.partialorder %v3107_v34, %v3190_v25  ;;  %v1456_v40 = vsub.f32 %v3107_v34, %v3190_v25 }
 0x284   : > { %v3195_v26 = vsel %vm1087_vm4, %v3158_v6, 128  ;;  %vm934_vm4 = vcmp.eq.s32.totalorder %v3158_v6, %v3186_v23 }
 0x285   : > { %v1133_v27 = vshra.s32 %v3195_v26, 16  ;;  %v1473_v54 = vmul.f32 1.442695, %v1456_v40 }
 0x286   : > { %v3198_v28 = vpop.xlane.xlu1 %1060  ;;  %v3200_v29 = vpop.xlane.xlu0 %1054 }
 0x287   : > { %4250 = vst [vmem:[#allocation12_spill] sm:$0xff] %v3198_v28  ;;  %4251 = vst [vmem:[#allocation13_spill] sm:$0xff] %v3200_v29  ;;  %vm1089_vm5 = vcmp.eq.f32.partialorder %v3112_v38, %v3198_v28  ;;  %vm1086_vm6 = vcmp.eq.f32.partialorder %v3110_v37, %v3200_v29  ;;  %v1455_v30 = vsub.f32 %v3110_v37, %v3200_v29  ;;  %v3208_v31 = vcvt.s32.f32 %v1133_v27 }
 0x288   : > { %v3211_v32 = vsel %vm1086_vm6, %v3158_v6, 128  ;;  %v3214_v33 = vsel %vm1089_vm5, %v3158_v6, 128  ;;  %v1458_v4 = vsub.f32 %v3112_v38, %v3198_v28  ;;  %vm925_vm5 = vcmp.eq.s32.totalorder %v3158_v6, %v3166_v13 }
 0x289   : > { %v1119_v35 = vshra.s32 %v3211_v32, 16  ;;  %v1471_v36 = vmul.f32 1.442695, %v1455_v30  ;;  %1136 = vmin.xlane.f32.xlu1 %v3208_v31  ;;  %v1161_v45 = vshra.s32 %v3214_v33, 16  ;;  %vm936_vm6 = vcmp.eq.s32.totalorder %v3158_v6, %v3188_v24 }
 0x28a   : > { %v3218_v39 = vpop.xlane.xlu1 %1058  ;;  %v1477_v27 = vmul.f32 1.442695, %v1458_v4 }
 0x28b   : > { %4252 = vst [vmem:[#allocation14_spill] sm:$0xff] %v3218_v39  ;;  %vm1088_vm7 = vcmp.eq.f32.partialorder %v3116_v41, %v3218_v39  ;;  %v3224_v37 = vpop.xlane.xlu0 %1062  ;;  %v3226_v42 = vcvt.s32.f32 %v1119_v35  ;;  %2581 = vpow2.f32 %v1471_v36  ;;  %v1457_v47 = vsub.f32 %v3116_v41, %v3218_v39 }
 0x28c   : > { %4253 = vst [vmem:[#allocation15_spill] sm:$0xff] %v3224_v37  ;;  %v3233_v50 = vsel %vm1088_vm7, %v3158_v6, 128  ;;  %vm1090_vm8 = vcmp.eq.f32.partialorder %v3118_v43, %v3224_v37  ;;  %v3242_v56 = vcvt.s32.f32 %v1161_v45  ;;  %2583 = vpow2.f32 %v1473_v54 }
 0x28d   : > { %1122 = vmin.xlane.f32.xlu0 %v3226_v42  ;;  %v1147_v52 = vshra.s32 %v3233_v50, 16  ;;  %v1475_v58 = vmul.f32 1.442695, %v1457_v47  ;;  %v3252_v3 = vsel %vm1090_vm8, %v3158_v6, 128  ;;  %v1459_v40 = vsub.f32 %v3118_v43, %v3224_v37 }
 0x28e   : > { %v3237_v34 = vpop.xlane.xlu1 %1064  ;;  %v1175_v62 = vshra.s32 %v3252_v3, 16  ;;  %vm926_vm7 = vcmp.eq.s32.totalorder %v3158_v6, %v3168_v14  ;;  %vm927_vm8 = vcmp.eq.s32.totalorder %v3158_v6, %v3170_v15 }
 0x28f   : > { %4254 = vst [vmem:[#allocation16_spill] sm:$0xff] %v3237_v34  ;;  %vm1091_vm9 = vcmp.eq.f32.partialorder %v3122_v44, %v3237_v34  ;;  %v3244_v60 = vcvt.s32.f32 %v1147_v52  ;;  %2585 = vpow2.f32 %v1475_v58  ;;  %v1460_v30 = vsub.f32 %v3122_v44, %v3237_v34 }
 0x290   : > { %v3247_v63 = vsel %vm1091_vm9, %v3158_v6, 128  ;;  %v3286_v47 = vcvt.s32.f32 %v1175_v62  ;;  %2587 = vpow2.f32 %v1477_v27  ;;  %vm928_vm9 = vcmp.eq.s32.totalorder %v3158_v6, %v3172_v16 }
 0x291   : > { %1164 = vmin.xlane.f32.xlu0 %v3242_v56  ;;  %v1189_v1 = vshra.s32 %v3247_v63, 16  ;;  %1150 = vmin.xlane.f32.xlu1 %v3244_v60 }
 0x292   : > { %v3257_v7 = vpop.xlane.xlu1 %1068 }
 0x293   : > { %4255 = vst [vmem:[#allocation17_spill] sm:$0xff] %v3257_v7  ;;  %v3259_v8 = vcvt.s32.f32 %v1189_v1  ;;  %v3261_v10 = vpop.xlane.xlu0 %1066  ;;  %vm1093_vm11 = vcmp.eq.f32.partialorder %v3125_v46, %v3257_v7  ;;  %v1481_v1 = vmul.f32 1.442695, %v1460_v30  ;;  %v1462_v4 = vsub.f32 %v3125_v46, %v3257_v7 }
 0x294   : > { %4256 = vst [vmem:[#allocation18_spill] sm:$0xff] %v3261_v10  ;;  %vm1092_vm10 = vcmp.eq.f32.partialorder %v3127_v49, %v3261_v10  ;;  %v3291_v54 = vsel %vm1093_vm11, %v3158_v6, 128  ;;  %vm930_vm11 = vcmp.eq.s32.totalorder %v3158_v6, %v3176_v18 }
 0x295   : > { %v3266_v11 = vpop.eup %2581  ;;  %1192 = vmin.xlane.f32.xlu1 %v3259_v8  ;;  %v3272_v12 = vsel %vm1092_vm10, %v3158_v6, 128  ;;  %v1217_v48 = vshra.s32 %v3291_v54, 16  ;;  %2589 = vpow2.f32 %v1481_v1  ;;  %v1485_v30 = vmul.f32 1.442695, %v1462_v4 }
 0x296   : > { %4257 = vst [vmem:[#allocation19_spill] sm:$0xff] %v3266_v11  ;;  %v3276_v35 = vpop.xlane.xlu1 %1072  ;;  %1503 = vadd.xlane.f32.xlu0 %v3266_v11  ;;  %v1203_v36 = vshra.s32 %v3272_v12, 16  ;;  %v3305_v5 = vpop.eup %2583  ;;  %v1461_v1 = vsub.f32 %v3127_v49, %v3261_v10  ;;  %vm929_vm10 = vcmp.eq.s32.totalorder %v3158_v6, %v3174_v17 }
 0x297   : > { %4258 = vst [vmem:[#allocation20_spill] sm:$0xff] %v3276_v35  ;;  %v3282_v45 = vpop.xlane.xlu0 %1070  ;;  %vm1095_vm12 = vcmp.eq.f32.partialorder %v3131_v51, %v3276_v35  ;;  %4261 = vst [vmem:[#allocation23_spill] sm:$0xff] %v3305_v5  ;;  %v3315_v7 = vcvt.s32.f32 %v1217_v48  ;;  %v1464_v11 = vsub.f32 %v3131_v51, %v3276_v35 }
 0x298   : > { %4259 = vst [vmem:[#allocation21_spill] sm:$0xff] %v3282_v45  ;;  %v3288_v52 = vcvt.s32.f32 %v1203_v36  ;;  %v3295_v58 = vsel %vm1095_vm12, %v3158_v6, 128  ;;  %vm1094_vm13 = vcmp.eq.f32.partialorder %v3133_v53, %v3282_v45  ;;  %v1479_v36 = vmul.f32 1.442695, %v1459_v40 }
 0x299   : > { %1178 = vmin.xlane.f32.xlu1 %v3286_v47  ;;  %v1245_v9 = vshra.s32 %v3295_v58, 16  ;;  %v3308_v34 = vpop.eup %2585  ;;  %v3312_v27 = vsel %vm1094_vm13, %v3158_v6, 128  ;;  %vm931_vm12 = vcmp.eq.s32.totalorder %v3158_v6, %v3178_v19  ;;  %vm932_vm13 = vcmp.eq.s32.totalorder %v3158_v6, %v3182_v21 }
 0x29a   : > { %v3301_v62 = vpop.xlane.xlu1 %1076  ;;  %1206 = vmin.xlane.f32.xlu0 %v3288_v52  ;;  %4262 = vst [vmem:[#allocation24_spill] sm:$0xff] %v3308_v34  ;;  %2591 = vpow2.f32 %v1479_v36  ;;  %v1231_v28 = vshra.s32 %v3312_v27, 16  ;;  %v3330_v48 = vpop.eup %2587 }
 0x29b   : > { %4260 = vst [vmem:[#allocation22_spill] sm:$0xff] %v3301_v62  ;;  %v3319_v37 = vcvt.s32.f32 %v1245_v9  ;;  %2593 = vpow2.f32 %v1485_v30  ;;  %vm1097_vm14 = vcmp.eq.f32.partialorder %v3137_v55, %v3301_v62  ;;  %v3328_v4 = vpop.xlane.xlu0 %1074  ;;  %4265 = vst [vmem:[#allocation27_spill] sm:$0xff] %v3330_v48  ;;  %v1463_v30 = vsub.f32 %v3133_v53, %v3282_v45 }
 0x29c   : > { %4264 = vst [vmem:[#allocation26_spill] sm:$0xff] %v3328_v4  ;;  %v3332_v36 = vcvt.s32.f32 %v1231_v28  ;;  %v3338_v9 = vsel %vm1097_vm14, %v3158_v6, 128  ;;  %vm1096_vm0 = vcmp.eq.f32.partialorder %v3139_v57, %v3328_v4  ;;  %v1483_v28 = vmul.f32 1.442695, %v1461_v1 }
 0x29d   : > { %1505 = vadd.xlane.f32.xlu1 %v3305_v5  ;;  %4263 = vst [vmem:[#allocation25_spill] sm:$0xff] %v3319_v37  ;;  %4267 = vst [vmem:[#allocation29_spill] sm:$0xff] %v3338_v9  ;;  %v3361_v45 = vsel %vm1096_vm0, %v3158_v6, 128  ;;  %v1487_v1 = vmul.f32 1.442695, %v1463_v30  ;;  %vm935_vm0 = vcmp.eq.s32.totalorder %v3158_v6, %v3184_v22  ;;  %v1118_v22 = vand.u32 65535, %v3211_v32 }
 0x29e   : > { %1507 = vadd.xlane.f32.xlu0 %v3308_v34  ;;  %v3317_v40 = vpop.xlane.xlu1 %1080  ;;  %4266 = vst [vmem:[#allocation28_spill] sm:$0xff] %v3332_v36  ;;  %v1273_v34 = vshra.s32 %v3338_v9, 16  ;;  %4270 = vst [vmem:[#allocation32_spill] sm:$0xff] %v3361_v45  ;;  %2595 = vpow2.f32 %v1483_v28  ;;  %v1259_v29 = vshra.s32 %v3361_v45, 16  ;;  %v1489_v30 = vmul.f32 1.442695, %v1464_v11 }
 0x29f   : > { %vm1099_vm15 = vcmp.eq.f32.partialorder %v3143_v59, %v3317_v40  ;;  %v3347_v39 = vpop.eup %2589  ;;  %v3355_v25 = vpop.xlane.xlu0 %1078  ;;  %2597 = vpow2.f32 %v1487_v1 }
 0x2a0   : > { %4268 = vst [vmem:[#allocation30_spill] sm:$0xff] %v3347_v39  ;;  %vm1098_vm2 = vcmp.eq.f32.partialorder %v3145_v61, %v3355_v25  ;;  %2599 = vpow2.f32 %v1489_v30  ;;  %v1467_v14 = vsub.f32 %v3145_v61, %v3355_v25 }
 0x2a1   : > { %1220 = vmin.xlane.f32.xlu1 %v3315_v7  ;;  %v3388_v45 = vsel %vm1098_vm2, %v3158_v6, 128 }
 0x2a2   : > { %1248 = vmin.xlane.f32.xlu0 %v3319_v37  ;;  %v3344_v10 = vpop.xlane.xlu1 %1084  ;;  %v3369_v37 = vcvt.s32.f32 %v1273_v34  ;;  %4274 = vst [vmem:[#allocation36_spill] sm:$0xff] %v3388_v45 }
 0x2a3   : > { %vm1101_vm1 = vcmp.eq.f32.partialorder %v3149_v0, %v3344_v10  ;;  %v3379_v28 = vpop.xlane.xlu0 %1082  ;;  %v1470_v15 = vsub.f32 %v3149_v0, %v3344_v10 }
 0x2a4   : > { %v3353_v5 = vpop.eup %2591  ;;  %vm1100_vm3 = vcmp.eq.f32.partialorder %v3151_v2, %v3379_v28 }
 0x2a5   : > { %1509 = vadd.xlane.f32.xlu1 %v3330_v48  ;;  %v3351_v48 = vsel %vm1099_vm15, %v3158_v6, 128  ;;  %4269 = vst [vmem:[#allocation31_spill] sm:$0xff] %v3353_v5  ;;  %v1501_v16 = vmul.f32 1.442695, %v1470_v15  ;;  %vm933_vm15 = vcmp.eq.s32.totalorder %v3158_v6, %v3180_v20 }
 0x2a6   : > { %1234 = vmin.xlane.f32.xlu0 %v3332_v36  ;;  %v1301_v9 = vshra.s32 %v3351_v48, 16  ;;  %v3367_v36 = vpop.eup %2593 }
 0x2a7   : > { %4271 = vst [vmem:[#allocation33_spill] sm:$0xff] %v3367_v36 }
 0x2a8   : > { %v3381_v35 = vcvt.s32.f32 %v1301_v9  ;;  %v1287_v9 = vshra.s32 %v3388_v45, 16  ;;  %v3396_v1 = vpop.eup %2595 }
 0x2a9   : > { %1513 = vadd.xlane.f32.xlu1 %v3347_v39  ;;  %v3373_v39 = vsel %vm1101_vm1, %v3158_v6, 128  ;;  %4276 = vst [vmem:[#allocation38_spill] sm:$0xff] %v3396_v1  ;;  %v3405_v30 = vpop.eup %2597 }
 0x2aa   : > { %1511 = vadd.xlane.f32.xlu0 %v3353_v5  ;;  %4272 = vst [vmem:[#allocation34_spill] sm:$0xff] %v3381_v35  ;;  %v1329_v34 = vshra.s32 %v3373_v39, 16  ;;  %v3384_v5 = vcvt.s32.f32 %v1259_v29  ;;  %v3400_v29 = vsel %vm1100_vm3, %v3158_v6, 128 }
 0x2ac   : > { %4273 = vst [vmem:[#allocation35_spill] sm:$0xff] %v3384_v5  ;;  %v3393_v11 = vcvt.s32.f32 %v1329_v34  ;;  %v1315_v34 = vshra.s32 %v3400_v29, 16 }
 0x2ad   : > { %1517 = vadd.xlane.f32.xlu1 %v3367_v36  ;;  %v1466_v36 = vsub.f32 %v3137_v55, %v3301_v62 }
 0x2ae   : > { %1276 = vmin.xlane.f32.xlu0 %v3369_v37  ;;  %4275 = vst [vmem:[#allocation37_spill] sm:$0xff] %v3393_v11 }
 0x2af   : > { %v1493_v62 = vmul.f32 1.442695, %v1466_v36  ;;  %v1468_v36 = vsub.f32 %v3143_v59, %v3317_v40 }
 0x2b1   : > { %1304 = vmin.xlane.f32.xlu1 %v3381_v35  ;;  %v3407_v35 = vcvt.s32.f32 %v1287_v9  ;;  %v4278_v9 = vmov 0.0   ;;  %2601 = vpow2.f32 %v1493_v62  ;;  %v1497_v62 = vmul.f32 1.442695, %v1468_v36 }
 0x2b2   : > { %1262 = vmin.xlane.f32.xlu0 %v3384_v5  ;;  %v2208_v45 = vsel %vm934_vm4, 1.0, %v4278_v9  ;;  %v3421_v5 = vcvt.s32.f32 %v1315_v34  ;;  %v2199_v23 = vsel %vm925_vm5, 1.0, %v4278_v9  ;;  %v2203_v36 = vsel %vm929_vm10, 1.0, %v4278_v9 }
 0x2b3   : > { %v1642_v34 = vmul.f32 %v2208_v45, %v3137_v55  ;;  %v1633_v24 = vmul.f32 %v2199_v23, %v3116_v41  ;;  %v2201_v45 = vsel %vm927_vm8, 1.0, %v4278_v9  ;;  %v1495_v41 = vmul.f32 1.442695, %v1467_v14 }
 0x2b4   : > { %v2205_v14 = vsel %vm931_vm12, 1.0, %v4278_v9  ;;  %v2206_v19 = vsel %vm932_vm13, 1.0, %v4278_v9  ;;  %v2209_v20 = vsel %vm935_vm0, 1.0, %v4278_v9 }
 0x2b5   : > { %1332 = vmin.xlane.f32.xlu1 %v3393_v11  ;;  %v1465_v11 = vsub.f32 %v3139_v57, %v3328_v4  ;;  %v2210_v4 = vsel %vm936_vm6, 1.0, %v4278_v9  ;;  %v1643_v15 = vmul.f32 %v2209_v20, %v3145_v61 }
 0x2b6   : > { %1515 = vadd.xlane.f32.xlu0 %v3396_v1  ;;  %v3418_v1 = vpop.eup %2599 }
 0x2b7   : > { %4277 = vst [vmem:[#allocation39_spill] sm:$0xff] %v3418_v1  ;;  %v1491_v13 = vmul.f32 1.442695, %v1465_v11  ;;  %v1644_v11 = vmul.f32 %v2210_v4, %v3143_v59  ;;  %v2202_v59 = vsel %vm928_vm9, 1.0, %v4278_v9 }
 0x2b9   : > { %1519 = vadd.xlane.f32.xlu1 %v3405_v30  ;;  %2603 = vpow2.f32 %v1491_v13  ;;  %v1635_v13 = vmul.f32 %v2201_v45, %v3118_v43  ;;  %v2207_v45 = vsel %vm933_vm15, 1.0, %v4278_v9 }
 0x2ba   : > { %1290 = vmin.xlane.f32.xlu0 %v3407_v35  ;;  %2605 = vpow2.f32 %v1497_v62 }
 0x2bb   : > { %v3447_v23 = vpop.eup %2601  ;;  %2607 = vpow2.f32 %v1495_v41  ;;  %v1641_v41 = vmul.f32 %v2207_v45, %v3139_v57  ;;  %v1216_v45 = vand.u32 65535, %v3291_v54  ;;  %v1230_v54 = vand.u32 65535, %v3312_v27 }
 0x2bc   : > { %2609 = vpow2.f32 %v1501_v16 }
 0x2bd   : > { %1521 = vadd.xlane.f32.xlu1 %v3418_v1  ;;  %v2200_v1 = vsel %vm926_vm7, 1.0, %v4278_v9  ;;  %v1232_v27 = vcvt.s32.f32 %v1230_v54 }
 0x2be   : > { %1318 = vmin.xlane.f32.xlu0 %v3421_v5  ;;  %v1634_v55 = vmul.f32 %v2200_v1, %v3112_v38  ;;  %v1469_v38 = vsub.f32 %v3151_v2, %v3379_v28  ;;  %v1636_v1 = vmul.f32 %v2202_v59, %v3122_v44  ;;  %v1132_v59 = vand.u32 65535, %v3195_v26 }
 0x2c0   : > { %v1499_v43 = vmul.f32 1.442695, %v1469_v38 }
 0x2c1   : > { %1669 = vadd.xlane.f32.xlu1 %v1642_v34  ;;  %v1637_v34 = vmul.f32 %v2203_v36, %v3127_v49  ;;  %v919_v49 = vpop.permute.xlu0 %918  ;;  %v1160_v36 = vand.u32 65535, %v3214_v33  ;;  %v1188_v33 = vand.u32 65535, %v3247_v63 }
 0x2c2   : > { %1651 = vadd.xlane.f32.xlu0 %v1633_v24  ;;  %v2204_v24 = vsel %vm930_vm11, 1.0, %v4278_v9  ;;  %2611 = vpow2.f32 %v1499_v43  ;;  %vm937_vm14 = vcmp.eq.s32.totalorder %v3158_v6, %v919_v49 }
 0x2c3   : > { %v3456_v4 = vpop.eup %2603  ;;  %v1638_v18 = vmul.f32 %v2204_v24, %v3125_v46  ;;  %v2211_v21 = vsel %vm937_vm14, 1.0, %v4278_v9  ;;  %v1190_v49 = vcvt.s32.f32 %v1188_v33  ;;  %v4285_v33 = vld [vmem:[#allocation28_spill] sm:$0xff] }
 0x2c4   : > { %v3463_v17 = vpop.eup %2605 }
 0x2c5   : > { %1673 = vadd.xlane.f32.xlu1 %v1644_v11  ;;  %v3470_v44 = vpop.eup %2607  ;;  %v1639_v11 = vmul.f32 %v2205_v14, %v3133_v53  ;;  %v1645_v53 = vmul.f32 %v2211_v21, %v3151_v2  ;;  %v1134_v2 = vcvt.s32.f32 %v1132_v59 }
 0x2c6   : > { %1653 = vadd.xlane.f32.xlu0 %v1634_v55  ;;  %v3477_v62 = vpop.eup %2609  ;;  %v1640_v55 = vmul.f32 %v2206_v19, %v3131_v51  ;;  %v922_v51 = vpop.permute.xlu1 %921 }
 0x2c7   : > { %vm938_vm2 = vcmp.eq.s32.totalorder %v3158_v6, %v922_v51 }
 0x2c8   : > { %v2212_v26 = vsel %vm938_vm2, 1.0, %v4278_v9 }
 0x2c9   : > { %1525 = vadd.xlane.f32.xlu1 %v3447_v23  ;;  %v1646_v24 = vmul.f32 %v2212_v26, %v3149_v0  ;;  %v4283_v26 = vld [vmem:[#allocation25_spill] sm:$0xff] }
 0x2ca   : > { %1655 = vadd.xlane.f32.xlu0 %v1635_v13 }
 0x2cc   : > { %v3485_v46 = vpop.eup %2611 }
 0x2cd   : > { %1523 = vadd.xlane.f32.xlu1 %v3456_v4 }
 0x2ce   : > { %1657 = vadd.xlane.f32.xlu0 %v1636_v1  ;;  %v1120_v1 = vcvt.s32.f32 %v1118_v22  ;;  %v4282_v22 = vld [vmem:[#allocation13_spill] sm:$0xff] }
 0x2d1   : > { %1529 = vadd.xlane.f32.xlu1 %v3463_v17 }
 0x2d2   : > { %1659 = vadd.xlane.f32.xlu0 %v1637_v34  ;;  %v1162_v34 = vcvt.s32.f32 %v1160_v36 }
 0x2d5   : > { %1527 = vadd.xlane.f32.xlu1 %v3470_v44 }
 0x2d6   : > { %1661 = vadd.xlane.f32.xlu0 %v1638_v18 }
 0x2d7   : > { %v3497_v13 = vpop.xlane.xlu1 %1647 }
 0x2d8   : > { %v3500_v38 = vpop.xlane.xlu0 %1649 }
 0x2d9   : > { %1533 = vadd.xlane.f32.xlu1 %v3477_v62 }
 0x2da   : > { %1663 = vadd.xlane.f32.xlu0 %v1639_v11 }
 0x2dd   : > { %1531 = vadd.xlane.f32.xlu1 %v3485_v46 }
 0x2de   : > { %1665 = vadd.xlane.f32.xlu0 %v1640_v55 }
 0x2e1   : > { %1675 = vadd.xlane.f32.xlu1 %v1645_v53 }
 0x2e2   : > { %1667 = vadd.xlane.f32.xlu0 %v1641_v41 }
 0x2e6   : > { %1671 = vadd.xlane.f32.xlu0 %v1643_v15  ;;  %v1244_v15 = vand.u32 65535, %v3295_v58 }
 0x316   : > { %v3503_v16 = vpop.xlane.xlu1 %1136 }
 0x317   : > { %vm1138_vm1 = vcmp.eq.f32.partialorder %v3208_v31, %v3503_v16  ;;  %v1146_v31 = vand.u32 65535, %v3233_v50  ;;  %v1174_v50 = vand.u32 65535, %v3252_v3 }
 0x318   : > { %v1139_v57 = vsel %vm1138_vm1, %v1134_v2, inf  ;;  %v1679_v2 = vsub.f32 %v3497_v13, %v4282_v22 }
 0x319   : > { %1140 = vmin.xlane.f32.xlu0 %v1139_v57  ;;  %v1176_v63 = vcvt.s32.f32 %v1174_v50 }
 0x31a   : > { %v3508_v61 = vpop.xlane.xlu0 %1122 }
 0x31b   : > { %vm1124_vm3 = vcmp.eq.f32.partialorder %v3226_v42, %v3508_v61  ;;  %v1148_v42 = vcvt.s32.f32 %v1146_v31 }
 0x31c   : > { %v1125_v32 = vsel %vm1124_vm3, %v1120_v1, inf }
 0x31d   : > { %1126 = vmin.xlane.f32.xlu1 %v1125_v32 }
 0x31e   : > { %v3514_v43 = vpop.xlane.xlu0 %1164  ;;  %v3517_v6 = vpop.xlane.xlu1 %1150 }
 0x31f   : > { %vm1166_vm4 = vcmp.eq.f32.partialorder %v3242_v56, %v3514_v43  ;;  %vm1152_vm5 = vcmp.eq.f32.partialorder %v3244_v60, %v3517_v6  ;;  %v1202_v60 = vand.u32 65535, %v3272_v12 }
 0x320   : > { %v1167_v18 = vsel %vm1166_vm4, %v1162_v34, inf  ;;  %v1153_v19 = vsel %vm1152_vm5, %v1148_v42, inf  ;;  %v1246_v34 = vcvt.s32.f32 %v1244_v15  ;;  %v4286_v42 = vld [vmem:[#allocation19_spill] sm:$0xff]  ;;  %v4288_v15 = vld [vmem:[#allocation29_spill] sm:$0xff]  ;;  %vm1438_vm4 = vcmask 7168  }
 0x321   : > { %1677 = vadd.xlane.f32.xlu1 %v1646_v24  ;;  %1168 = vmin.xlane.f32.xlu0 %v1167_v18  ;;  %v1204_v55 = vcvt.s32.f32 %v1202_v60 }
 0x322   : > { %v3525_v14 = vpop.xlane.xlu1 %1192 }
 0x323   : > { %v1504_v11 = vpop.xlane.xlu0 %1503  ;;  %vm1194_vm6 = vcmp.eq.f32.partialorder %v3259_v8, %v3525_v14 }
 0x324   : > { %2613 = vrcp.f32 %v1504_v11  ;;  %v1195_v0 = vsel %vm1194_vm6, %v1190_v49, inf }
 0x325   : > { %1154 = vmin.xlane.f32.xlu0 %v1153_v19  ;;  %2615 = vlog2.f32 %v1504_v11  ;;  %1196 = vmin.xlane.f32.xlu1 %v1195_v0 }
 0x326   : > { %v3530_v56 = vpop.xlane.xlu1 %1178 }
 0x327   : > { %v3533_v21 = vpop.xlane.xlu0 %1206  ;;  %vm1180_vm7 = vcmp.eq.f32.partialorder %v3286_v47, %v3530_v56  ;;  %v1218_v47 = vcvt.s32.f32 %v1216_v45 }
 0x328   : > { %4279 = vst [vmem:[#allocation40_spill] sm:$0xff] %v3533_v21  ;;  %v1181_v3 = vsel %vm1180_vm7, %v1176_v63, inf  ;;  %vm1208_vm8 = vcmp.eq.f32.partialorder %v3288_v52, %v3533_v21 }
 0x329   : > { %1182 = vmin.xlane.f32.xlu0 %v1181_v3  ;;  %v1209_v41 = vsel %vm1208_vm8, %v1204_v55, inf  ;;  %v4287_v3 = vld [vmem:[#allocation11_spill] sm:$0xff] }
 0x32a   : > { %v1506_v8 = vpop.xlane.xlu1 %1505  ;;  %v1680_v55 = vsub.f32 %v3500_v38, %v4287_v3 }
 0x32b   : > { %2617 = vrcp.f32 %v1506_v8  ;;  %v3540_v53 = vpop.xlane.xlu0 %1507 }
 0x32c   : > { %2619 = vlog2.f32 %v1506_v8 }
 0x32d   : > { %2621 = vrcp.f32 %v3540_v53  ;;  %1210 = vmin.xlane.f32.xlu0 %v1209_v41 }
 0x32e   : > { %v2614_v12 = vpop.eup %2613  ;;  %v3543_v20 = vpop.xlane.xlu1 %1220 }
 0x32f   : > { %4280 = vst [vmem:[#allocation41_spill] sm:$0xff] %v3543_v20  ;;  %v2616_v51 = vpop.eup %2615  ;;  %v1551_v52 = vmul.f32 %v2614_v12, %v1504_v11  ;;  %v3546_v59 = vpop.xlane.xlu0 %1248  ;;  %vm1222_vm9 = vcmp.eq.f32.partialorder %v3315_v7, %v3543_v20 }
 0x330   : > { %4281 = vst [vmem:[#allocation42_spill] sm:$0xff] %v3546_v59  ;;  %v1696_v57 = vmul.f32 0.6931472, %v2616_v51  ;;  %v1223_v1 = vsel %vm1222_vm9, %v1218_v47, inf  ;;  %vm1250_vm10 = vcmp.eq.f32.partialorder %v4283_v26, %v3546_v59  ;;  %v1272_v51 = vand.u32 65535, %v4288_v15  ;;  %v4291_v26 = vld [vmem:[#allocation23_spill] sm:$0xff] }
 0x331   : > { %v1567_v36 = vsub.f32 2.0, %v1551_v52  ;;  %1224 = vmin.xlane.f32.xlu1 %v1223_v1  ;;  %v1251_v24 = vsel %vm1250_vm10, %v1246_v34, inf  ;;  %v1300_v52 = vand.u32 65535, %v3351_v48  ;;  %v4290_v1 = vld [vmem:[#allocation32_spill] sm:$0xff] }
 0x332   : > { %v3555_v58 = vsub.f32 %v1679_v2, %v1696_v57  ;;  %v3557_v32 = vpop.xlane.xlu1 %1509 }
 0x333   : > { %v1583_v31 = vmul.f32 %v2614_v12, %v1567_v36  ;;  %2623 = vrcp.f32 %v3557_v32  ;;  %v3560_v7 = vpop.xlane.xlu0 %1234  ;;  %v1258_v36 = vand.u32 65535, %v4290_v1 }
 0x334   : > { %4284 = vst [vmem:[#allocation13_spill] sm:$0xff] %v3560_v7  ;;  %v1743_v13 = vmax.f32 %v3555_v58, -9.2103405  ;;  %vm1236_vm11 = vcmp.eq.f32.partialorder %v4285_v33, %v3560_v7 }
 0x335   : > { %v2618_v18 = vpop.eup %2617  ;;  %v1599_v49 = vmul.f32 %v4286_v42, %v1583_v31  ;;  %1252 = vmin.xlane.f32.xlu1 %v1251_v24  ;;  %v1237_v50 = vsel %vm1236_vm11, %v1232_v27, inf  ;;  %v1274_v27 = vcvt.s32.f32 %v1272_v51  ;;  %v1328_v24 = vand.u32 65535, %v3373_v39 }
 0x336   : > { %v2620_v11 = vpop.eup %2619  ;;  %v1759_v19 = vmul.f32 1.442695, %v1743_v13  ;;  %v1552_v0 = vmul.f32 %v2618_v18, %v1506_v8  ;;  %1238 = vmin.xlane.f32.xlu0 %v1237_v50  ;;  %v3568_v63 = vpop.xlane.xlu1 %1513 }
 0x337   : > { %v2622_v60 = vpop.eup %2621  ;;  %1615 = vst [vmem:[%s2972_s11] sm:$0xff] %v1599_v49  ;;  %v1698_v45 = vmul.f32 0.6931472, %v2620_v11  ;;  %2625 = vrcp.f32 %v3568_v63  ;;  %v3574_v41 = vpop.xlane.xlu0 %1511  ;;  %v1330_v1 = vcvt.s32.f32 %v1328_v24 }
 0x338   : > { %2627 = vpow2.f32 %v1759_v19  ;;  %v1568_v12 = vsub.f32 2.0, %v1552_v0  ;;  %v1553_v47 = vmul.f32 %v2622_v60, %v3540_v53  ;;  %v1302_v19 = vcvt.s32.f32 %v1300_v52  ;;  %v4294_v0 = vld [vmem:[#allocation34_spill] sm:$0xff] }
 0x339   : > { %v3578_v8 = vsub.f32 %v1680_v55, %v1698_v45  ;;  %2629 = vrcp.f32 %v3574_v41 }
 0x33a   : > { %v1584_v54 = vmul.f32 %v2618_v18, %v1568_v12  ;;  %v1569_v22 = vsub.f32 2.0, %v1553_v47  ;;  %v3582_v38 = vpop.xlane.xlu1 %1517  ;;  %v4292_v18 = vld [vmem:[#allocation24_spill] sm:$0xff] }
 0x33b   : > { %v1744_v2 = vmax.f32 %v3578_v8, -9.2103405  ;;  %v3585_v57 = vpop.xlane.xlu0 %1276  ;;  %2631 = vrcp.f32 %v3582_v38  ;;  %v4297_v47 = vld [vmem:[#allocation36_spill] sm:$0xff] }
 0x33c   : > { %4289 = vst [vmem:[#allocation25_spill] sm:$0xff] %v3585_v57  ;;  %v1600_v34 = vmul.f32 %v4291_v26, %v1584_v54  ;;  %v1585_v31 = vmul.f32 %v2622_v60, %v1569_v22  ;;  %vm1278_vm12 = vcmp.eq.f32.partialorder %v3369_v37, %v3585_v57  ;;  %v1260_v60 = vcvt.s32.f32 %v1258_v36  ;;  %v4296_v37 = vld [vmem:[#allocation35_spill] sm:$0xff]  ;;  %v4299_v26 = vld [vmem:[#allocation37_spill] sm:$0xff] }
 0x33d   : > { %v2624_v48 = vpop.eup %2623  ;;  %v1761_v33 = vmul.f32 1.442695, %v1744_v2  ;;  %v1279_v50 = vsel %vm1278_vm12, %v1274_v27, inf  ;;  %v1286_v15 = vand.u32 65535, %v4297_v47 }
 0x33e   : > { %1616 = vst [vmem:[%s2972_s11 + $0x8] sm:$0xff] %v1600_v34  ;;  %v1601_v42 = vmul.f32 %v4292_v18, %v1585_v31  ;;  %v1554_v49 = vmul.f32 %v2624_v48, %v3557_v32  ;;  %v3598_v11 = vpop.xlane.xlu1 %1304  ;;  %1280 = vmin.xlane.f32.xlu1 %v1279_v50  ;;  %v4300_v31 = vlaneseq }
 0x33f   : > { %4293 = vst [vmem:[#allocation28_spill] sm:$0xff] %v3598_v11  ;;  %2633 = vpow2.f32 %v1761_v33  ;;  %vm1306_vm13 = vcmp.eq.f32.partialorder %v4294_v0, %v3598_v11  ;;  %v3602_v39 = vpop.xlane.xlu0 %1262  ;;  %v4301_v33 = vld [vmem:[#allocation27_spill] sm:$0xff]  ;;  %v1288_v50 = vcvt.s32.f32 %v1286_v15 }
 0x340   : > { %4295 = vst [vmem:[#allocation19_spill] sm:$0xff] %v3602_v39  ;;  %1617 = vst [vmem:[%s2972_s11 + $0x10] sm:$0xff] %v1601_v42  ;;  %v1570_v3 = vsub.f32 2.0, %v1554_v49  ;;  %vm1264_vm14 = vcmp.eq.f32.partialorder %v4296_v37, %v3602_v39  ;;  %v1307_v55 = vsel %vm1306_vm13, %v1302_v19, inf  ;;  %2635 = vlog2.f32 %v3540_v53 }
 0x341   : > { %v2626_v45 = vpop.eup %2625  ;;  %v1265_v12 = vsel %vm1264_vm14, %v1260_v60, inf  ;;  %v3618_v27 = vshrl.u32 %v4300_v31, 7  ;;  %v1314_v19 = vand.u32 65535, %v3400_v29  ;;  %v3628_v37 = vstv %s2213_s24 }
 0x342   : > { %v2628_v51 = vpop.eup %2627  ;;  %v1586_v52 = vmul.f32 %v2624_v48, %v1570_v3  ;;  %v1556_v54 = vmul.f32 %v2626_v45, %v3568_v63  ;;  %1266 = vmin.xlane.f32.xlu0 %v1265_v12  ;;  %v3609_v22 = vpop.xlane.xlu1 %1332  ;;  %1308 = vmin.xlane.f32.xlu1 %v1307_v55 }
 0x343   : > { %4298 = vst [vmem:[#allocation11_spill] sm:$0xff] %v3609_v22  ;;  %v1791_v36 = vsub.f32 1.0, %v2628_v51  ;;  %vm1334_vm15 = vcmp.eq.f32.partialorder %v4299_v26, %v3609_v22  ;;  %v3614_v34 = vpop.xlane.xlu0 %1515  ;;  %v2630_v48 = vpop.eup %2629  ;;  %v974_v55 = vadd.s32 8, %v3618_v27  ;;  %v990_v58 = vadd.s32 %v3628_v37, %v3618_v27 }
 0x344   : > { %v1602_v18 = vmul.f32 %v4301_v33, %v1586_v52  ;;  %v1572_v42 = vsub.f32 2.0, %v1556_v54  ;;  %2637 = vrcp.f32 %v3614_v34  ;;  %v1335_v24 = vsel %vm1334_vm15, %v1330_v1, inf  ;;  %v4304_v33 = vld [vmem:[#allocation31_spill] sm:$0xff] }
 0x345   : > { %v1807_v49 = vmul.f32 %v1791_v36, %v1791_v36  ;;  %v1555_v53 = vmul.f32 %v2630_v48, %v3574_v41  ;;  %v2632_v0 = vpop.eup %2631  ;;  %2639 = vlog2.f32 %v3557_v32  ;;  %v4303_v32 = vld [vmem:[#allocation30_spill] sm:$0xff]  ;;  %v1316_v26 = vcvt.s32.f32 %v1314_v19 }
 0x346   : > { %1618 = vst [vmem:[%s2972_s11 + $0x18] sm:$0xff] %v1602_v18  ;;  %v1588_v60 = vmul.f32 %v2626_v45, %v1572_v42  ;;  %v3626_v3 = vpop.xlane.xlu1 %1519  ;;  %v1558_v15 = vmul.f32 %v2632_v0, %v3582_v38  ;;  %1336 = vmin.xlane.f32.xlu1 %v1335_v24  ;;  %v991_v31 = vadd.s32 %v3628_v37, %v974_v55  ;;  %vm1006_vm2 = vcmp.lt.s32.totalorder %v990_v58, 200 }
 0x347   : > { %v1823_v12 = vmul.f32 %v1807_v49, %v1743_v13  ;;  %v1571_v47 = vsub.f32 2.0, %v1555_v53  ;;  %2641 = vrcp.f32 %v3626_v3  ;;  %v3635_v29 = vpop.xlane.xlu0 %1290  ;;  %v4306_v53 = vld [vmem:[#allocation33_spill] sm:$0xff]  ;;  %v3666_v8 = vsel %vm1006_vm2, 1.0, %v4278_v9 }
 0x348   : > { %4302 = vst [vmem:[#allocation29_spill] sm:$0xff] %v3635_v29  ;;  %v1604_v45 = vmul.f32 %v4303_v32, %v1588_v60  ;;  %vm1292_vm0 = vcmp.eq.f32.partialorder %v3407_v35, %v3635_v29  ;;  %v1574_v54 = vsub.f32 2.0, %v1558_v15  ;;  %vm1007_vm3 = vcmp.lt.s32.totalorder %v991_v31, 200 }
 0x349   : > { %v2634_v51 = vpop.eup %2633  ;;  %v1587_v52 = vmul.f32 %v2630_v48, %v1571_v47  ;;  %v1293_v1 = vsel %vm1292_vm0, %v1288_v50, inf  ;;  %v1839_v48 = vsub.f32 0.0, %v1823_v12  ;;  %v976_v58 = vadd.s32 24, %v3618_v27 }
 0x34a   : > { %v1792_v13 = vsub.f32 1.0, %v2634_v51  ;;  %1620 = vst [vmem:[%s2972_s11 + $0x28] sm:$0xff] %v1604_v45  ;;  %1294 = vmin.xlane.f32.xlu0 %v1293_v1  ;;  %v3643_v36 = vpop.xlane.xlu1 %1521  ;;  %v1590_v42 = vmul.f32 %v2632_v0, %v1574_v54  ;;  %v2636_v49 = vpop.eup %2635  ;;  %v975_v0 = vadd.s32 16, %v3618_v27  ;;  %v4307_v45 = vld [vmem:[#allocation14_spill] sm:$0xff]  ;;  %v3669_v1 = vsel %vm1007_vm3, 1.0, %v4278_v9 }
 0x34b   : > { %v1603_v18 = vmul.f32 %v4304_v33, %v1587_v52  ;;  %2643 = vrcp.f32 %v3643_v36  ;;  %v3648_v35 = vpop.xlane.xlu0 %1318  ;;  %v1855_v47 = vmul.f32 0.25, %v1839_v48  ;;  %v1700_v32 = vmul.f32 0.6931472, %v2636_v49 }
 0x34c   : > { %4305 = vst [vmem:[#allocation32_spill] sm:$0xff] %v3648_v35  ;;  %v1808_v24 = vmul.f32 %v1792_v13, %v1792_v13  ;;  %2645 = vlog2.f32 %v3574_v41  ;;  %vm1320_vm1 = vcmp.eq.f32.partialorder %v3421_v5, %v3648_v35  ;;  %v1606_v50 = vmul.f32 %v4306_v53, %v1590_v42 }
 0x34d   : > { %1619 = vst [vmem:[%s2972_s11 + $0x20] sm:$0xff] %v1603_v18  ;;  %v1321_v19 = vsel %vm1320_vm1, %v1316_v26, inf  ;;  %2647 = vlog2.f32 %v3568_v63  ;;  %v3672_v63 = vadd.s32 %v3628_v37, %v975_v0 }
 0x34e   : > { %v2638_v60 = vpop.eup %2637  ;;  %v1824_v55 = vmul.f32 %v1808_v24, %v1744_v2  ;;  %1322 = vmin.xlane.f32.xlu0 %v1321_v19  ;;  %v3658_v12 = vpop.xlane.xlu1 %1669  ;;  %1622 = vst [vmem:[%s2972_s11 + $0x38] sm:$0xff] %v1606_v50  ;;  %2649 = vlog2.f32 %v3614_v34  ;;  %v1871_v24 = vmul.f32 %v3666_v8, %v1855_v47  ;;  %v4308_v50 = vld [vmem:[#allocation12_spill] sm:$0xff] }
 0x34f   : > { %v1557_v5 = vmul.f32 %v2638_v60, %v3614_v34  ;;  %v1652_v41 = vpop.xlane.xlu0 %1651  ;;  %v2640_v15 = vpop.eup %2639  ;;  %2651 = vlog2.f32 %v3582_v38  ;;  %v977_v34 = vadd.s32 32, %v3618_v27  ;;  %vm1008_vm6 = vcmp.lt.s32.totalorder %v3672_v63, 200 }
 0x350   : > { %v1681_v51 = vsub.f32 %v1652_v41, %v4307_v45  ;;  %v1840_v52 = vsub.f32 0.0, %v1824_v55  ;;  %v1702_v48 = vmul.f32 0.6931472, %v2640_v15 }
 0x351   : > { %v2642_v2 = vpop.eup %2641  ;;  %v1573_v54 = vsub.f32 2.0, %v1557_v5  ;;  %v4309_v5 = vld [vmem:[#allocation38_spill] sm:$0xff] }
 0x352   : > { %v1559_v13 = vmul.f32 %v2642_v2, %v3626_v3  ;;  %v3675_v26 = vsub.f32 %v1681_v51, %v1700_v32  ;;  %v3677_v31 = vpop.xlane.xlu1 %1673  ;;  %v1856_v33 = vmul.f32 0.25, %v1840_v52 }
 0x353   : > { %v1589_v18 = vmul.f32 %v2638_v60, %v1573_v54  ;;  %v1654_v42 = vpop.xlane.xlu0 %1653  ;;  %v978_v60 = vadd.s32 40, %v3618_v27 }
 0x354   : > { %v1575_v49 = vsub.f32 2.0, %v1559_v13  ;;  %v4230_v53 = vmax.f32 %v3675_v26, -9.2103405  ;;  %v1682_v19 = vsub.f32 %v1654_v42, %v4308_v50  ;;  %v1872_v0 = vmul.f32 %v3669_v1, %v1856_v33  ;;  %v4310_v50 = vld [vmem:[#allocation15_spill] sm:$0xff] }
 0x355   : > { %v2644_v55 = vpop.eup %2643  ;;  %v1605_v41 = vmul.f32 %v4309_v5, %v1589_v18  ;;  %v1888_v13 = vsel %vm1438_vm4, %v1871_v24, 0.0  ;;  %v993_v33 = vadd.s32 %v3628_v37, %v976_v58  ;;  %v994_v58 = vadd.s32 %v3628_v37, %v977_v34 }
 0x356   : > { %v2646_v15 = vpop.eup %2645  ;;  %v1591_v32 = vmul.f32 %v2642_v2, %v1575_v49  ;;  %v1560_v47 = vmul.f32 %v2644_v55, %v3643_v36  ;;  %v1763_v45 = vmul.f32 1.442695, %v4230_v53  ;;  %v3692_v51 = vsub.f32 %v1682_v19, %v1702_v48  ;;  %v1526_v52 = vpop.xlane.xlu1 %1525  ;;  %v4315_v53 = vld [vmem:[#allocation17_spill] sm:$0xff] }
 0x357   : > { %1621 = vst [vmem:[%s2972_s11 + $0x30] sm:$0xff] %v1605_v41  ;;  %2653 = vrcp.f32 %v1526_v52  ;;  %v1656_v38 = vpop.xlane.xlu0 %1655  ;;  %v1889_v54 = vsel %vm1438_vm4, %v1872_v0, 0.0  ;;  %v2648_v49 = vpop.eup %2647  ;;  %v1704_v48 = vmul.f32 0.6931472, %v2646_v15  ;;  %vm1009_vm5 = vcmp.lt.s32.totalorder %v993_v33, 200  ;;  %v4311_v15 = vld [vmem:[#allocation39_spill] sm:$0xff] }
 0x358   : > { %v1607_v2 = vmul.f32 %v3405_v30, %v1591_v32  ;;  %v1576_v18 = vsub.f32 2.0, %v1560_v47  ;;  %2655 = vpow2.f32 %v1763_v45  ;;  %v4228_v42 = vmax.f32 %v3692_v51, -9.2103405 }
 0x359   : > { %2657 = vlog2.f32 %v1526_v52  ;;  %v1683_v19 = vsub.f32 %v1656_v38, %v4310_v50  ;;  %v3701_v5 = vadd.f32 %v1889_v54, %v1888_v13  ;;  %v995_v30 = vadd.s32 %v3628_v37, %v978_v60  ;;  %v2650_v13 = vpop.eup %2649 }
 0x35a   : > { %1623 = vst [vmem:[%s2972_s11 + $0x40] sm:$0xff] %v1607_v2  ;;  %v1592_v41 = vmul.f32 %v2644_v55, %v1576_v18  ;;  %v1765_v24 = vmul.f32 1.442695, %v4228_v42  ;;  %v1524_v0 = vpop.xlane.xlu1 %1523  ;;  %v4312_v55 = vld [vmem:[#allocation16_spill] sm:$0xff]  ;;  %v1706_v54 = vmul.f32 0.6931472, %v2648_v49 }
 0x35b   : > { %v3708_v32 = vsub.f32 %v1683_v19, %v1704_v48  ;;  %2659 = vrcp.f32 %v1524_v0  ;;  %v1658_v47 = vpop.xlane.xlu0 %1657  ;;  %v979_v60 = vadd.s32 48, %v3618_v27  ;;  %vm1011_vm7 = vcmp.lt.s32.totalorder %v995_v30, 200  ;;  %v2652_v48 = vpop.eup %2651  ;;  %v4313_v30 = vld [vmem:[#allocation18_spill] sm:$0xff] }
 0x35c   : > { %v1608_v45 = vmul.f32 %v4311_v15, %v1592_v41  ;;  %2661 = vpow2.f32 %v1765_v24  ;;  %v1684_v38 = vsub.f32 %v1658_v47, %v4312_v55  ;;  %vm1010_vm8 = vcmp.lt.s32.totalorder %v994_v58, 200 }
 0x35d   : > { %v4227_v2 = vmax.f32 %v3708_v32, -9.2103405  ;;  %2663 = vlog2.f32 %v3626_v3  ;;  %v3726_v19 = vsel %vm1009_vm5, 1.0, %v4278_v9  ;;  %v3731_v3 = vsel %vm1008_vm6, 1.0, %v4278_v9 }
 0x35e   : > { %1624 = vst [vmem:[%s2972_s11 + $0x48] sm:$0xff] %v1608_v45  ;;  %v3717_v34 = vsub.f32 %v1684_v38, %v1706_v54  ;;  %v3719_v18 = vpop.xlane.xlu1 %1529  ;;  %v1708_v24 = vmul.f32 0.6931472, %v2650_v13  ;;  %v3737_v15 = vsel %vm1011_vm7, 1.0, %v4278_v9  ;;  %v3740_v33 = vsel %vm1010_vm8, 1.0, %v4278_v9 }
 0x35f   : > { %v1767_v50 = vmul.f32 1.442695, %v4227_v2  ;;  %2665 = vrcp.f32 %v3719_v18  ;;  %v1660_v49 = vpop.xlane.xlu0 %1659  ;;  %v3743_v45 = vadd.s32 %v3628_v37, %v979_v60  ;;  %v980_v60 = vadd.s32 56, %v3618_v27 }
 0x360   : > { %v4229_v41 = vmax.f32 %v3717_v34, -9.2103405  ;;  %2667 = vlog2.f32 %v3719_v18  ;;  %v1685_v58 = vsub.f32 %v1660_v49, %v4313_v30  ;;  %v4314_v49 = vld [vmem:[#allocation22_spill] sm:$0xff]  ;;  %v984_v42 = vadd.s32 88, %v3618_v27 }
 0x361   : > { %v2654_v47 = vpop.eup %2653  ;;  %2669 = vpow2.f32 %v1767_v50  ;;  %v1690_v30 = vsub.f32 %v3658_v12, %v4314_v49  ;;  %v1710_v29 = vmul.f32 0.6931472, %v2652_v48  ;;  %vm1012_vm9 = vcmp.lt.s32.totalorder %v3743_v45, 200 }
 0x362   : > { %v2656_v63 = vpop.eup %2655  ;;  %2671 = vlog2.f32 %v3643_v36  ;;  %v1562_v55 = vmul.f32 %v2654_v47, %v1526_v52  ;;  %v1769_v38 = vmul.f32 1.442695, %v4229_v41  ;;  %v3748_v54 = vsub.f32 %v1685_v58, %v1708_v24  ;;  %v3750_v13 = vpop.xlane.xlu1 %1527 }
 0x363   : > { %v2658_v50 = vpop.eup %2657  ;;  %2673 = vrcp.f32 %v3750_v13  ;;  %v1662_v2 = vpop.xlane.xlu0 %1661  ;;  %v1793_v58 = vsub.f32 1.0, %v2656_v63 }
 0x364   : > { %v1578_v36 = vsub.f32 2.0, %v1562_v55  ;;  %v1718_v52 = vmul.f32 0.6931472, %v2658_v50  ;;  %2675 = vpow2.f32 %v1769_v38  ;;  %v4237_v41 = vmax.f32 %v3748_v54, -9.2103405 }
 0x365   : > { %v2660_v24 = vpop.eup %2659  ;;  %2677 = vlog2.f32 %v1524_v0  ;;  %v1686_v35 = vsub.f32 %v1662_v2, %v4315_v53  ;;  %v3769_v53 = vadd.s32 %v3628_v37, %v984_v42 }
 0x366   : > { %v2662_v22 = vpop.eup %2661  ;;  %v1594_v12 = vmul.f32 %v2654_v47, %v1578_v36  ;;  %v3759_v49 = vsub.f32 %v1690_v30, %v1718_v52  ;;  %v1561_v39 = vmul.f32 %v2660_v24, %v1524_v0  ;;  %v1771_v11 = vmul.f32 1.442695, %v4237_v41  ;;  %v3763_v57 = vpop.xlane.xlu1 %1533 }
 0x367   : > { %v1794_v55 = vsub.f32 1.0, %v2662_v22  ;;  %v3765_v38 = vsub.f32 %v1686_v35, %v1710_v29  ;;  %2679 = vrcp.f32 %v3763_v57  ;;  %v1664_v63 = vpop.xlane.xlu0 %1663  ;;  %v2664_v2 = vpop.eup %2663  ;;  %v3773_v0 = vadd.s32 %v3628_v37, %v980_v60 }
 0x368   : > { %v1610_v48 = vmul.f32 %v3447_v23, %v1594_v12  ;;  %v1577_v47 = vsub.f32 2.0, %v1561_v39  ;;  %2681 = vpow2.f32 %v1771_v11  ;;  %v1809_v30 = vmul.f32 %v1793_v58, %v1793_v58  ;;  %v4316_v11 = vld [vmem:[#allocation21_spill] sm:$0xff] }
 0x369   : > { %v2666_v50 = vpop.eup %2665  ;;  %v1692_v22 = vsub.f32 %v3677_v31, %v3317_v40  ;;  %2683 = vlog2.f32 %v3750_v13  ;;  %v4239_v29 = vmax.f32 %v3765_v38, -9.2103405  ;;  %v1687_v39 = vsub.f32 %v1664_v63, %v4316_v11 }
 0x36a   : > { %v2668_v35 = vpop.eup %2667  ;;  %1626 = vst [vmem:[%s2972_s11 + $0x58] sm:$0xff] %v1610_v48  ;;  %v1593_v36 = vmul.f32 %v2660_v24, %v1577_v47  ;;  %v1564_v23 = vmul.f32 %v2666_v50, %v3719_v18  ;;  %v1810_v52 = vmul.f32 %v1794_v55, %v1794_v55  ;;  %v1712_v40 = vmul.f32 0.6931472, %v2664_v2  ;;  %v3785_v31 = vpop.xlane.xlu1 %1531 }
 0x36b   : > { %v2670_v60 = vpop.eup %2669  ;;  %v1722_v12 = vmul.f32 0.6931472, %v2668_v35  ;;  %v1773_v58 = vmul.f32 1.442695, %v4239_v29  ;;  %v1666_v41 = vpop.xlane.xlu0 %1665  ;;  %v3789_v18 = vadd.s32 64, %v3618_v27  ;;  %vm1013_vm10 = vcmp.lt.s32.totalorder %v3773_v0, 200 }
 0x36c   : > { %v2672_v7 = vpop.eup %2671  ;;  %v1795_v48 = vsub.f32 1.0, %v2670_v60  ;;  %v1609_v42 = vmul.f32 %v3456_v4, %v1593_v36  ;;  %v1580_v24 = vsub.f32 2.0, %v1564_v23  ;;  %v4317_v55 = vmax.f32 %v3675_v26, -9.2103405 }
 0x36d   : > { %v2674_v63 = vpop.eup %2673  ;;  %v3793_v35 = vsub.f32 %v1692_v22, %v1722_v12  ;;  %2685 = vpow2.f32 %v1773_v58  ;;  %v3795_v11 = vsub.f32 %v1687_v39, %v1712_v40  ;;  %v4318_v29 = vmax.f32 %v3759_v49, -9.2103405 }
 0x36e   : > { %v1825_v47 = vmul.f32 %v1809_v30, %v4317_v55  ;;  %v2676_v2 = vpop.eup %2675  ;;  %1625 = vst [vmem:[%s2972_s11 + $0x50] sm:$0xff] %v1609_v42  ;;  %v1596_v60 = vmul.f32 %v2666_v50, %v1580_v24  ;;  %v1563_v4 = vmul.f32 %v2674_v63, %v3750_v13  ;;  %2687 = vrcp.f32 %v3785_v31  ;;  %v4320_v24 = vld [vmem:[#allocation20_spill] sm:$0xff] }
 0x36f   : > { %v1781_v59 = vmul.f32 1.442695, %v4318_v29  ;;  %v2678_v36 = vpop.eup %2677  ;;  %v4319_v23 = vmax.f32 %v3692_v51, -9.2103405  ;;  %v1796_v30 = vsub.f32 1.0, %v2676_v2  ;;  %v1668_v12 = vpop.xlane.xlu0 %1667  ;;  %v1811_v58 = vmul.f32 %v1795_v48, %v1795_v48 }
 0x370   : > { %v4242_v22 = vmax.f32 %v3793_v35, -9.2103405  ;;  %v4244_v39 = vmax.f32 %v3795_v11, -9.2103405  ;;  %v1612_v29 = vmul.f32 %v3463_v17, %v1596_v60  ;;  %v1579_v42 = vsub.f32 2.0, %v1563_v4 }
 0x371   : > { %v1826_v26 = vmul.f32 %v1810_v52, %v4319_v23  ;;  %v1714_v50 = vmul.f32 0.6931472, %v2672_v7  ;;  %v2680_v13 = vpop.eup %2679  ;;  %v1812_v40 = vmul.f32 %v1796_v30, %v1796_v30  ;;  %v1688_v55 = vsub.f32 %v1666_v41, %v4320_v24 }
 0x372   : > { %v1785_v51 = vmul.f32 1.442695, %v4242_v22  ;;  %v1775_v52 = vmul.f32 1.442695, %v4244_v39  ;;  %v2682_v2 = vpop.eup %2681  ;;  %v1841_v23 = vsub.f32 0.0, %v1825_v47  ;;  %2689 = vpow2.f32 %v1781_v59  ;;  %1628 = vst [vmem:[%s2972_s11 + $0x68] sm:$0xff] %v1612_v29 }
 0x373   : > { %v1595_v48 = vmul.f32 %v2674_v63, %v1579_v42  ;;  %v1566_v17 = vmul.f32 %v2680_v13, %v3763_v57  ;;  %v2684_v7 = vpop.eup %2683  ;;  %v1842_v60 = vsub.f32 0.0, %v1826_v26  ;;  %v4321_v4 = vmax.f32 %v3717_v34, -9.2103405  ;;  %v1672_v21 = vpop.xlane.xlu0 %1671  ;;  %v4323_v42 = vld [vmem:[#allocation26_spill] sm:$0xff] }
 0x374   : > { %v1797_v20 = vsub.f32 1.0, %v2682_v2  ;;  %v3817_v22 = vsub.f32 %v1688_v55, %v1714_v50  ;;  %v4322_v39 = vmax.f32 %v3708_v32, -9.2103405  ;;  %2691 = vpow2.f32 %v1775_v52 }
 0x375   : > { %v1828_v30 = vmul.f32 %v1812_v40, %v4321_v4  ;;  %v1611_v47 = vmul.f32 %v3470_v44, %v1595_v48  ;;  %v1582_v59 = vsub.f32 2.0, %v1566_v17  ;;  %2693 = vpow2.f32 %v1785_v51 }
 0x376   : > { %v1827_v41 = vmul.f32 %v1811_v58, %v4322_v39  ;;  %v1813_v63 = vmul.f32 %v1797_v20, %v1797_v20  ;;  %v1752_v29 = vmax.f32 %v3817_v22, -9.2103405  ;;  %v1689_v26 = vsub.f32 %v1668_v12, %v4323_v42 }
 0x377   : > { %1627 = vst [vmem:[%s2972_s11 + $0x60] sm:$0xff] %v1611_v47  ;;  %v1598_v34 = vmul.f32 %v2680_v13, %v1582_v59  ;;  %v1716_v40 = vmul.f32 0.6931472, %v2678_v36  ;;  %v1691_v50 = vsub.f32 %v1672_v21, %v3355_v25  ;;  %v1720_v24 = vmul.f32 0.6931472, %v2684_v7  ;;  %v2686_v55 = vpop.eup %2685 }
 0x378   : > { %v1858_v32 = vmul.f32 0.25, %v1842_v60  ;;  %v1844_v39 = vsub.f32 0.0, %v1828_v30  ;;  %v4324_v44 = vmax.f32 %v3748_v54, -9.2103405  ;;  %v1777_v20 = vmul.f32 1.442695, %v1752_v29  ;;  %v2688_v51 = vpop.eup %2687 }
 0x379   : > { %v1798_v52 = vsub.f32 1.0, %v2686_v55  ;;  %v1614_v12 = vmul.f32 %v3477_v62, %v1598_v34  ;;  %v3831_v2 = vsub.f32 %v1689_v26, %v1716_v40  ;;  %v3833_v36 = vsub.f32 %v1691_v50, %v1720_v24 }
 0x37a   : > { %v1829_v58 = vmul.f32 %v1813_v63, %v4324_v44  ;;  %v1857_v25 = vmul.f32 0.25, %v1841_v23  ;;  %v1843_v21 = vsub.f32 0.0, %v1827_v41  ;;  %v1565_v13 = vmul.f32 %v2688_v51, %v3785_v31 }
 0x37b   : > { %2695 = vpow2.f32 %v1777_v20  ;;  %v1814_v17 = vmul.f32 %v1798_v52, %v1798_v52  ;;  %1630 = vst [vmem:[%s2972_s11 + $0x78] sm:$0xff] %v1614_v12  ;;  %v1753_v54 = vmax.f32 %v3831_v2, -9.2103405  ;;  %v1755_v7 = vmax.f32 %v3833_v36, -9.2103405 }
 0x37c   : > { %v1845_v48 = vsub.f32 0.0, %v1829_v58  ;;  %v1860_v60 = vmul.f32 0.25, %v1844_v39  ;;  %v1581_v4 = vsub.f32 2.0, %v1565_v13  ;;  %v3842_v62 = vsel %vm1012_vm9, 1.0, %v4278_v9  ;;  %v2690_v23 = vpop.eup %2689 }
 0x37d   : > { %v4325_v30 = vmax.f32 %v3765_v38, -9.2103405  ;;  %v1779_v47 = vmul.f32 1.442695, %v1753_v54  ;;  %v1783_v59 = vmul.f32 1.442695, %v1755_v7  ;;  %v1874_v63 = vmul.f32 %v3726_v19, %v1858_v32 }
 0x37e   : > { %v1859_v42 = vmul.f32 0.25, %v1843_v21  ;;  %v1597_v26 = vmul.f32 %v2688_v51, %v1581_v4  ;;  %v1873_v45 = vmul.f32 %v3731_v3, %v1857_v25  ;;  %v998_v34 = vadd.s32 %v3628_v37, %v3789_v18  ;;  %v2692_v40 = vpop.eup %2691 }
 0x37f   : > { %v1830_v41 = vmul.f32 %v1814_v17, %v4325_v30  ;;  %v1861_v50 = vmul.f32 0.25, %v1845_v48  ;;  %2697 = vpow2.f32 %v1779_v47  ;;  %v982_v24 = vadd.s32 72, %v3618_v27  ;;  %v2694_v55 = vpop.eup %2693 }
 0x380   : > { %v1802_v39 = vsub.f32 1.0, %v2690_v23  ;;  %v1799_v44 = vsub.f32 1.0, %v2692_v40  ;;  %v1613_v58 = vmul.f32 %v3485_v46, %v1597_v26  ;;  %2699 = vpow2.f32 %v1783_v59 }
 0x381   : > { %v1846_v38 = vsub.f32 0.0, %v1830_v41  ;;  %v1893_v20 = vsel %vm1438_vm4, %v1874_v63, 0.0  ;;  %v1891_v51 = vsel %vm1438_vm4, %v1873_v45, 0.0  ;;  %v1876_v18 = vmul.f32 %v3737_v15, %v1860_v60 }
 0x382   : > { %v1815_v52 = vmul.f32 %v1799_v44, %v1799_v44  ;;  %1629 = vst [vmem:[%s2972_s11 + $0x70] sm:$0xff] %v1613_v58  ;;  %v1892_v12 = vadd.f32 %v1891_v51, %v3701_v5  ;;  %v1875_v25 = vmul.f32 %v3740_v33, %v1859_v42  ;;  %v3866_v21 = vsel %vm1013_vm10, 1.0, %v4278_v9 }
 0x383   : > { %v1862_v32 = vmul.f32 0.25, %v1846_v38  ;;  %v1804_v46 = vsub.f32 1.0, %v2694_v55  ;;  %v1877_v13 = vmul.f32 %v3842_v62, %v1861_v50  ;;  %v999_v48 = vadd.s32 %v3628_v37, %v982_v24 }
 0x384   : > { %vm1014_vm11 = vcmp.lt.s32.totalorder %v998_v34, 200  ;;  %v1818_v4 = vmul.f32 %v1802_v39, %v1802_v39  ;;  %v4326_v60 = vmax.f32 %v3795_v11, -9.2103405  ;;  %v1895_v5 = vsel %vm1438_vm4, %v1875_v25, 0.0 }
 0x385   : > { %v2696_v17 = vpop.eup %2695  ;;  %v1894_v30 = vadd.f32 %v1893_v20, %v1892_v12  ;;  %v985_v47 = vadd.s32 96, %v3618_v27  ;;  %v1897_v0 = vsel %vm1438_vm4, %v1876_v18, 0.0  ;;  %v1878_v59 = vmul.f32 %v3866_v21, %v1862_v32 }
 0x386   : > { %v1831_v23 = vmul.f32 %v1815_v52, %v4326_v60  ;;  %v1800_v41 = vsub.f32 1.0, %v2696_v17  ;;  %v3877_v26 = vsel %vm1014_vm11, 1.0, %v4278_v9  ;;  %v983_v45 = vadd.s32 80, %v3618_v27 }
 0x387   : > { %v1896_v42 = vadd.f32 %v1895_v5, %v1894_v30  ;;  %v1820_v34 = vmul.f32 %v1804_v46, %v1804_v46  ;;  %v1899_v40 = vsel %vm1438_vm4, %v1877_v13, 0.0  ;;  %vm1015_vm12 = vcmp.lt.s32.totalorder %v999_v48, 200 }
 0x388   : > { %v1847_v63 = vsub.f32 0.0, %v1831_v23  ;;  %v1816_v11 = vmul.f32 %v1800_v41, %v1800_v41  ;;  %v4327_v50 = vmax.f32 %v3759_v49, -9.2103405  ;;  %2701 = vlog2.f32 %v3785_v31 }
 0x389   : > { %v1898_v55 = vadd.f32 %v1897_v0, %v1896_v42  ;;  %v2698_v39 = vpop.eup %2697  ;;  %v1002_v58 = vadd.s32 %v3628_v37, %v985_v47  ;;  %v1901_v32 = vsel %vm1438_vm4, %v1878_v59, 0.0  ;;  %v986_v20 = vadd.s32 104, %v3618_v27 }
 0x38a   : > { %v1834_v38 = vmul.f32 %v1818_v4, %v4327_v50  ;;  %v1863_v24 = vmul.f32 0.25, %v1847_v63  ;;  %v1832_v44 = vmul.f32 %v1816_v11, %v1752_v29  ;;  %v2700_v51 = vpop.eup %2699  ;;  %v1801_v18 = vsub.f32 1.0, %v2698_v39 }
 0x38b   : > { %v1900_v52 = vadd.f32 %v1899_v40, %v1898_v55  ;;  %v1000_v12 = vadd.s32 %v3628_v37, %v983_v45  ;;  %v4328_v31 = vmax.f32 %v3793_v35, -9.2103405  ;;  %v1803_v13 = vsub.f32 1.0, %v2700_v51  ;;  %v1676_v40 = vpop.xlane.xlu1 %1675 }
 0x38c   : > { %v1879_v49 = vmul.f32 %v3877_v26, %v1863_v24  ;;  %v1848_v46 = vsub.f32 0.0, %v1832_v44  ;;  %v3895_v22 = vsel %vm1015_vm12, 1.0, %v4278_v9  ;;  %v1817_v29 = vmul.f32 %v1801_v18, %v1801_v18 }
 0x38d   : > { %v1836_v25 = vmul.f32 %v1820_v34, %v4328_v31  ;;  %v1902_v17 = vadd.f32 %v1901_v32, %v1900_v52  ;;  %v1850_v60 = vsub.f32 0.0, %v1834_v38  ;;  %v1819_v5 = vmul.f32 %v1803_v13, %v1803_v13 }
 0x38e   : > { %v1903_v4 = vsel %vm1438_vm4, %v1879_v49, 0.0  ;;  %v1864_v23 = vmul.f32 0.25, %v1848_v46  ;;  %vm1017_vm13 = vcmp.lt.s32.totalorder %v3769_v53, 200  ;;  %v1833_v30 = vmul.f32 %v1817_v29, %v1753_v54 }
 0x38f   : > { %v1904_v35 = vadd.f32 %v1903_v4, %v1902_v17  ;;  %vm1016_vm14 = vcmp.lt.s32.totalorder %v1000_v12, 200  ;;  %v1003_v41 = vadd.s32 %v3628_v37, %v986_v20  ;;  %vm1018_vm15 = vcmp.lt.s32.totalorder %v1002_v58, 200 }
 0x390   : > { %v1835_v48 = vmul.f32 %v1819_v5, %v1755_v7  ;;  %v1880_v47 = vmul.f32 %v3895_v22, %v1864_v23  ;;  %v1849_v0 = vsub.f32 0.0, %v1833_v30  ;;  %v1866_v59 = vmul.f32 0.25, %v1850_v60 }
 0x391   : > { %v1852_v63 = vsub.f32 0.0, %v1836_v25  ;;  %v3907_v53 = vsel %vm1017_vm13, 1.0, %v4278_v9  ;;  %v3910_v2 = vsel %vm1016_vm14, 1.0, %v4278_v9  ;;  %v3913_v11 = vsel %vm1018_vm15, 1.0, %v4278_v9 }
 0x392   : > { %v1851_v42 = vsub.f32 0.0, %v1835_v48  ;;  %v1905_v45 = vsel %vm1438_vm4, %v1880_v47, 0.0  ;;  %v2702_v54 = vpop.eup %2701  ;;  %v1865_v34 = vmul.f32 0.25, %v1849_v0  ;;  %vm1019_vm0 = vcmp.lt.s32.totalorder %v1003_v41, 200 }
 0x393   : > { %v1906_v36 = vadd.f32 %v1905_v45, %v1904_v35  ;;  %v1882_v50 = vmul.f32 %v3907_v53, %v1866_v59  ;;  %v1868_v24 = vmul.f32 0.25, %v1852_v63  ;;  %v1724_v55 = vmul.f32 0.6931472, %v2702_v54 }
 0x394   : > { %v1867_v7 = vmul.f32 0.25, %v1851_v42  ;;  %v1881_v38 = vmul.f32 %v3910_v2, %v1865_v34  ;;  %v3919_v44 = vsel %vm1019_vm0, 1.0, %v4278_v9  ;;  %v1693_v32 = vsub.f32 %v1676_v40, %v3379_v28  ;;  %v2710_v40 = vld [vmem:[%s2965_s14] sm:$0xff] }
 0x395   : > { %v1884_v51 = vmul.f32 %v3919_v44, %v1868_v24  ;;  %v1909_v18 = vsel %vm1438_vm4, %v1882_v50, 0.0  ;;  %2703 = vlog2.f32 %v3763_v57  ;;  %v1143_v29 = vcvt.f32.s32 %v3503_v16  ;;  %v2709_v16 = vld [vmem:[%s2965_s14 + $0x8] sm:$0xff] }
 0x396   : > { %v1883_v39 = vmul.f32 %v3913_v11, %v1867_v7  ;;  %v1907_v58 = vsel %vm1438_vm4, %v1881_v38, 0.0  ;;  %v3926_v49 = vsub.f32 %v1693_v32, %v1724_v55  ;;  %v1129_v17 = vcvt.f32.s32 %v3508_v61 }
 0x397   : > { %v1908_v20 = vadd.f32 %v1907_v58, %v1906_v36  ;;  %v1913_v25 = vsel %vm1438_vm4, %v1884_v51, 0.0  ;;  %v1144_v60 = vshll.u32 %v1143_v29, 16  ;;  %v1171_v5 = vcvt.f32.s32 %v3514_v43 }
 0x398   : > { %v1911_v52 = vsel %vm1438_vm4, %v1883_v39, 0.0  ;;  %v1757_v46 = vmax.f32 %v3926_v49, -9.2103405  ;;  %v987_v41 = vadd.s32 112, %v3618_v27  ;;  %v1130_v48 = vshll.u32 %v1129_v17, 16 }
 0x399   : > { %v1910_v12 = vadd.f32 %v1909_v18, %v1908_v20  ;;  %v1157_v0 = vcvt.f32.s32 %v3517_v6  ;;  %v4329_v59 = vmov 0   ;;  %v1172_v43 = vshll.u32 %v1171_v5, 16  ;;  %v4330_v18 = vld [vmem:[#allocation40_spill] sm:$0xff] }
 0x39a   : > { %v1787_v28 = vmul.f32 1.442695, %v1757_v46  ;;  %v1004_v7 = vadd.s32 %v3628_v37, %v987_v41  ;;  %v1199_v39 = vcvt.f32.s32 %v3525_v14  ;;  %v1185_v51 = vcvt.f32.s32 %v3530_v56  ;;  %v2711_v14 = vld [vmem:[%s2965_s14 + $0x18] sm:$0xff] }
 0x39b   : > { %v1912_v31 = vadd.f32 %v1911_v52, %v1910_v12  ;;  %v1158_v24 = vshll.u32 %v1157_v0, 16  ;;  %v988_v49 = vadd.s32 120, %v3618_v27 }
 0x39c   : > { %2705 = vpow2.f32 %v1787_v28  ;;  %vm1020_vm6 = vcmp.lt.s32.totalorder %v1004_v7, 200  ;;  %v1186_v5 = vshll.u32 %v1185_v51, 16  ;;  %v4331_v7 = vld [vmem:[#allocation41_spill] sm:$0xff] }
 0x39d   : > { %v3930_v13 = vadd.f32 %v1913_v25, %v1912_v31 }
 0x39f   : > { %v2704_v57 = vpop.eup %2703 }
 0x3a0   : > { %v1726_v34 = vmul.f32 0.6931472, %v2704_v57 }
 0x3a6   : > { %v1141_v4 = vpop.xlane.xlu0 %1140  ;;  %v2706_v6 = vpop.eup %2705 }
 0x3a7   : > { %v1142_v23 = vcvt.f32.s32 %v1141_v4  ;;  %v1805_v52 = vsub.f32 1.0, %v2706_v6  ;;  %v1200_v4 = vshll.u32 %v1199_v39, 16  ;;  %v1227_v6 = vcvt.f32.s32 %v4331_v7 }
 0x3a9   : > { %v1145_v30 = vadd.s32 %v1144_v60, %v1142_v23  ;;  %v1821_v41 = vmul.f32 %v1805_v52, %v1805_v52  ;;  %v1228_v52 = vshll.u32 %v1227_v6, 16 }
 0x3aa   : > { %v1127_v35 = vpop.xlane.xlu1 %1126 }
 0x3ab   : > { %v1128_v47 = vcvt.f32.s32 %v1127_v35  ;;  %vm1343_vm1 = vcmp.eq.s32.totalorder %v1145_v30, %v2709_v16  ;;  %vm1407_vm2 = vcmp.ne.s32.totalorder %v1145_v30, %v2709_v16  ;;  %v3970_v35 = vsel %vm1020_vm6, 1.0, %v4278_v9  ;;  %v2712_v16 = vld [vmem:[%s2965_s14 + $0x10] sm:$0xff] }
 0x3ac   : > { %v2231_v61 = vsel %vm1343_vm1, 1.0, %v4278_v9  ;;  %v1423_v63 = vsel %vm1407_vm2, 1, %v4329_v59 }
 0x3ad   : > { %v1131_v42 = vadd.s32 %v1130_v48, %v1128_v47  ;;  %v1391_v45 = vmul.f32 %v2231_v61, %v3669_v1  ;;  %1440 = vst.msk [vmem:[%s2970_s18 + $0x8] sm:$0xff] %vm1438_vm4, %v1423_v63 }
 0x3ae   : > { %v1169_v54 = vpop.xlane.xlu0 %1168  ;;  %v1678_v36 = vpop.xlane.xlu1 %1677 }
 0x3af   : > { %vm1342_vm3 = vcmp.eq.s32.totalorder %v1131_v42, %v2710_v40  ;;  %vm1406_vm5 = vcmp.ne.s32.totalorder %v1131_v42, %v2710_v40  ;;  %v1170_v50 = vcvt.f32.s32 %v1169_v54  ;;  %v1694_v38 = vsub.f32 %v1678_v36, %v3344_v10  ;;  %v4332_v40 = vld [vmem:[#allocation42_spill] sm:$0xff] }
 0x3b0   : > { %v2230_v55 = vsel %vm1342_vm3, 1.0, %v4278_v9  ;;  %v1422_v1 = vsel %vm1406_vm5, 1, %v4329_v59  ;;  %v1213_v10 = vcvt.f32.s32 %v4330_v18  ;;  %v1934_v31 = vsel %vm1438_vm4, %v1391_v45, 0.0 }
 0x3b1   : > { %v1390_v58 = vmul.f32 %v2230_v55, %v3666_v8  ;;  %1439 = vst.msk [vmem:[%s2970_s18] sm:$0xff] %vm1438_vm4, %v1422_v1  ;;  %v1173_v32 = vadd.s32 %v1172_v43, %v1170_v50  ;;  %v3955_v20 = vsub.f32 %v1694_v38, %v1726_v34  ;;  %v2713_v43 = vld [vmem:[%s2965_s14 + $0x28] sm:$0xff]  ;;  %v1255_v50 = vcvt.f32.s32 %v4332_v40  ;;  %v2714_v55 = vld [vmem:[%s2965_s14 + $0x20] sm:$0xff] }
 0x3b2   : > { %v1155_v12 = vpop.xlane.xlu0 %1154  ;;  %v1197_v28 = vpop.xlane.xlu1 %1196  ;;  %v1214_v0 = vshll.u32 %v1213_v10, 16  ;;  %v1837_v38 = vmul.f32 %v1821_v41, %v1757_v46 }
 0x3b3   : > { %v1933_v25 = vsel %vm1438_vm4, %v1390_v58, 0.0  ;;  %vm1409_vm7 = vcmp.ne.s32.totalorder %v1173_v32, %v2711_v14  ;;  %v1758_v8 = vmax.f32 %v3955_v20, -9.2103405  ;;  %vm1345_vm8 = vcmp.eq.s32.totalorder %v1173_v32, %v2711_v14  ;;  %v2717_v20 = vld [vmem:[%s2965_s14 + $0x48] sm:$0xff] }
 0x3b4   : > { %v1935_v29 = vadd.f32 %v1934_v31, %v1933_v25  ;;  %v1425_v56 = vsel %vm1409_vm7, 1, %v4329_v59  ;;  %v1156_v17 = vcvt.f32.s32 %v1155_v12  ;;  %v1198_v23 = vcvt.f32.s32 %v1197_v28  ;;  %v4333_v12 = vld [vmem:[#allocation13_spill] sm:$0xff] }
 0x3b5   : > { %1442 = vst.msk [vmem:[%s2970_s18 + $0x18] sm:$0xff] %vm1438_vm4, %v1425_v56  ;;  %v1789_v60 = vmul.f32 1.442695, %v1758_v8  ;;  %v2233_v57 = vsel %vm1345_vm8, 1.0, %v4278_v9  ;;  %v1241_v31 = vcvt.f32.s32 %v4333_v12  ;;  %v1853_v25 = vsub.f32 0.0, %v1837_v38  ;;  %v2715_v56 = vld [vmem:[%s2965_s14 + $0x30] sm:$0xff] }
 0x3b6   : > { %v1159_v30 = vadd.s32 %v1158_v24, %v1156_v17  ;;  %v1201_v48 = vadd.s32 %v1200_v4, %v1198_v23  ;;  %v1183_v47 = vpop.xlane.xlu0 %1182  ;;  %v1393_v45 = vmul.f32 %v2233_v57, %v3726_v19  ;;  %v1256_v57 = vshll.u32 %v1255_v50, 16  ;;  %v4334_v50 = vld [vmem:[#allocation25_spill] sm:$0xff] }
 0x3b7   : > { %2707 = vpow2.f32 %v1789_v60  ;;  %v1184_v61 = vcvt.f32.s32 %v1183_v47  ;;  %v1005_v60 = vadd.s32 %v3628_v37, %v988_v49  ;;  %v1869_v47 = vmul.f32 0.25, %v1853_v25 }
 0x3b8   : > { %vm1344_vm9 = vcmp.eq.s32.totalorder %v1159_v30, %v2712_v16  ;;  %vm1408_vm10 = vcmp.ne.s32.totalorder %v1159_v30, %v2712_v16  ;;  %vm1347_vm11 = vcmp.eq.s32.totalorder %v1201_v48, %v2713_v43  ;;  %vm1411_vm12 = vcmp.ne.s32.totalorder %v1201_v48, %v2713_v43 }
 0x3b9   : > { %v2232_v63 = vsel %vm1344_vm9, 1.0, %v4278_v9  ;;  %v1424_v42 = vsel %vm1408_vm10, 1, %v4329_v59  ;;  %v1427_v34 = vsel %vm1411_vm12, 1, %v4329_v59  ;;  %v1187_v36 = vadd.s32 %v1186_v5, %v1184_v61 }
 0x3ba   : > { %v1392_v54 = vmul.f32 %v2232_v63, %v3731_v3  ;;  %1441 = vst.msk [vmem:[%s2970_s18 + $0x10] sm:$0xff] %vm1438_vm4, %v1424_v42  ;;  %v2235_v24 = vsel %vm1347_vm11, 1.0, %v4278_v9  ;;  %1444 = vst.msk [vmem:[%s2970_s18 + $0x28] sm:$0xff] %vm1438_vm4, %v1427_v34  ;;  %v1211_v19 = vpop.xlane.xlu0 %1210  ;;  %v1938_v46 = vsel %vm1438_vm4, %v1393_v45, 0.0  ;;  %v1242_v48 = vshll.u32 %v1241_v31, 16  ;;  %v2716_v42 = vld [vmem:[%s2965_s14 + $0x38] sm:$0xff] }
 0x3bb   : > { %vm1346_vm13 = vcmp.eq.s32.totalorder %v1187_v36, %v2714_v55  ;;  %vm1410_vm14 = vcmp.ne.s32.totalorder %v1187_v36, %v2714_v55  ;;  %v1212_v1 = vcvt.f32.s32 %v1211_v19  ;;  %v1395_v51 = vmul.f32 %v2235_v24, %v3737_v15  ;;  %v4336_v31 = vld [vmem:[#allocation19_spill] sm:$0xff] }
 0x3bc   : > { %v1936_v3 = vsel %vm1438_vm4, %v1392_v54, 0.0  ;;  %v2234_v58 = vsel %vm1346_vm13, 1.0, %v4278_v9  ;;  %v1426_v32 = vsel %vm1410_vm14, 1, %v4329_v59  ;;  %vm1021_vm3 = vcmp.lt.s32.totalorder %v1005_v60, 200 }
 0x3bd   : > { %v1937_v39 = vadd.f32 %v1936_v3, %v1935_v29  ;;  %v1394_v18 = vmul.f32 %v2234_v58, %v3740_v33  ;;  %1443 = vst.msk [vmem:[%s2970_s18 + $0x20] sm:$0xff] %vm1438_vm4, %v1426_v32  ;;  %v1215_v10 = vadd.s32 %v1214_v0, %v1212_v1  ;;  %v1942_v5 = vsel %vm1438_vm4, %v1395_v51, 0.0  ;;  %v2718_v58 = vld [vmem:[%s2965_s14 + $0x40] sm:$0xff] }
 0x3be   : > { %v1225_v28 = vpop.xlane.xlu1 %1224  ;;  %v1885_v40 = vmul.f32 %v3970_v35, %v1869_v47  ;;  %v1283_v38 = vcvt.f32.s32 %v4334_v50  ;;  %v1269_v25 = vcvt.f32.s32 %v4336_v31 }
 0x3bf   : > { %v1939_v14 = vadd.f32 %v1938_v46, %v1937_v39  ;;  %v1940_v29 = vsel %vm1438_vm4, %v1394_v18, 0.0  ;;  %vm1348_vm15 = vcmp.eq.s32.totalorder %v1215_v10, %v2715_v56  ;;  %vm1412_vm0 = vcmp.ne.s32.totalorder %v1215_v10, %v2715_v56 }
 0x3c0   : > { %v1226_v27 = vcvt.f32.s32 %v1225_v28  ;;  %v2236_v33 = vsel %vm1348_vm15, 1.0, %v4278_v9  ;;  %v1428_v4 = vsel %vm1412_vm0, 1, %v4329_v59  ;;  %v1915_v49 = vsel %vm1438_vm4, %v1885_v40, 0.0 }
 0x3c1   : > { %v2708_v17 = vpop.eup %2707  ;;  %v1941_v15 = vadd.f32 %v1940_v29, %v1939_v14  ;;  %v1396_v30 = vmul.f32 %v2236_v33, %v3842_v62  ;;  %1445 = vst.msk [vmem:[%s2970_s18 + $0x30] sm:$0xff] %vm1438_vm4, %v1428_v4  ;;  %v1916_v28 = vadd.f32 %v1915_v49, %v3930_v13  ;;  %v1284_v29 = vshll.u32 %v1283_v38, 16  ;;  %v4339_v38 = vld [vmem:[#allocation32_spill] sm:$0xff] }
 0x3c2   : > { %v1806_v23 = vsub.f32 1.0, %v2708_v17  ;;  %v1229_v41 = vadd.s32 %v1228_v52, %v1226_v27  ;;  %v1253_v16 = vpop.xlane.xlu1 %1252  ;;  %v4335_v52 = vld [vmem:[#allocation28_spill] sm:$0xff] }
 0x3c3   : > { %v1943_v0 = vadd.f32 %v1942_v5, %v1941_v15  ;;  %v1944_v63 = vsel %vm1438_vm4, %v1396_v30, 0.0  ;;  %v1239_v37 = vpop.xlane.xlu0 %1238  ;;  %v1254_v54 = vcvt.f32.s32 %v1253_v16  ;;  %v1311_v12 = vcvt.f32.s32 %v4335_v52 }
 0x3c4   : > { %v1822_v61 = vmul.f32 %v1806_v23, %v1806_v23  ;;  %vm1349_vm1 = vcmp.eq.s32.totalorder %v1229_v41, %v2716_v42  ;;  %vm1413_vm2 = vcmp.ne.s32.totalorder %v1229_v41, %v2716_v42  ;;  %v1240_v7 = vcvt.f32.s32 %v1239_v37  ;;  %v4337_v41 = vld [vmem:[#allocation11_spill] sm:$0xff] }
 0x3c5   : > { %v1945_v43 = vadd.f32 %v1944_v63, %v1943_v0  ;;  %v2237_v62 = vsel %vm1349_vm1, 1.0, %v4278_v9  ;;  %v1429_v45 = vsel %vm1413_vm2, 1, %v4329_v59  ;;  %v1257_v6 = vadd.s32 %v1256_v57, %v1254_v54 }
 0x3c6   : > { %v1838_v34 = vmul.f32 %v1822_v61, %v1758_v8  ;;  %v1397_v36 = vmul.f32 %v2237_v62, %v3866_v21  ;;  %1446 = vst.msk [vmem:[%s2970_s18 + $0x38] sm:$0xff] %vm1438_vm4, %v1429_v45  ;;  %v1243_v3 = vadd.s32 %v1242_v48, %v1240_v7  ;;  %v4023_v21 = vsel %vm1021_vm3, 1.0, %v4278_v9  ;;  %v2719_v48 = vld [vmem:[%s2965_s14 + $0x58] sm:$0xff] }
 0x3c7   : > { %vm1351_vm5 = vcmp.eq.s32.totalorder %v1257_v6, %v2717_v20  ;;  %vm1415_vm6 = vcmp.ne.s32.totalorder %v1257_v6, %v2717_v20  ;;  %v1312_v60 = vshll.u32 %v1311_v12, 16  ;;  %v1270_v23 = vshll.u32 %v1269_v25, 16  ;;  %v4338_v61 = vld [vmem:[#allocation29_spill] sm:$0xff]  ;;  %v2721_v6 = vld [vmem:[%s2965_s14 + $0x68] sm:$0xff] }
 0x3c8   : > { %v1854_v24 = vsub.f32 0.0, %v1838_v34  ;;  %v1946_v19 = vsel %vm1438_vm4, %v1397_v36, 0.0  ;;  %v2239_v1 = vsel %vm1351_vm5, 1.0, %v4278_v9  ;;  %v1431_v39 = vsel %vm1415_vm6, 1, %v4329_v59 }
 0x3c9   : > { %v1947_v55 = vadd.f32 %v1946_v19, %v1945_v43  ;;  %vm1350_vm7 = vcmp.eq.s32.totalorder %v1243_v3, %v2718_v58  ;;  %1448 = vst.msk [vmem:[%s2970_s18 + $0x48] sm:$0xff] %vm1438_vm4, %v1431_v39  ;;  %vm1414_vm8 = vcmp.ne.s32.totalorder %v1243_v3, %v2718_v58  ;;  %v1399_v46 = vmul.f32 %v2239_v1, %v3895_v22  ;;  %v2720_v43 = vld [vmem:[%s2965_s14 + $0x50] sm:$0xff]  ;;  %v2722_v1 = vld [vmem:[%s2965_s14 + $0x78] sm:$0xff] }
 0x3ca   : > { %v1870_v8 = vmul.f32 0.25, %v1854_v24  ;;  %v2238_v32 = vsel %vm1350_vm7, 1.0, %v4278_v9  ;;  %v1430_v18 = vsel %vm1414_vm8, 1, %v4329_v59  ;;  %v1339_v57 = vcvt.f32.s32 %v4337_v41 }
 0x3cb   : > { %v1398_v51 = vmul.f32 %v2238_v32, %v3877_v26  ;;  %1447 = vst.msk [vmem:[%s2970_s18 + $0x40] sm:$0xff] %vm1438_vm4, %v1430_v18  ;;  %v1281_v14 = vpop.xlane.xlu1 %1280  ;;  %v1950_v15 = vsel %vm1438_vm4, %v1399_v46, 0.0  ;;  %v1297_v63 = vcvt.f32.s32 %v4338_v61  ;;  %v1325_v24 = vcvt.f32.s32 %v4339_v38  ;;  %v2723_v18 = vld [vmem:[%s2965_s14 + $0x60] sm:$0xff] }
 0x3cc   : > { %v1886_v10 = vmul.f32 %v4023_v21, %v1870_v8  ;;  %v1282_v22 = vcvt.f32.s32 %v1281_v14  ;;  %v1340_v45 = vshll.u32 %v1339_v57, 16 }
 0x3cd   : > { %v1948_v56 = vsel %vm1438_vm4, %v1398_v51, 0.0  ;;  %v1298_v50 = vshll.u32 %v1297_v63, 16  ;;  %v1326_v58 = vshll.u32 %v1325_v24, 16  ;;  %v1887_v63 = vld [vmem:[#allocation4] sm:$0x1] }
 0x3ce   : > { %v1917_v26 = vsel %vm1438_vm4, %v1886_v10, 0.0  ;;  %v1949_v27 = vadd.f32 %v1948_v56, %v1947_v55  ;;  %v1285_v33 = vadd.s32 %v1284_v29, %v1282_v22  ;;  %v2724_v56 = vld [vmem:[%s2965_s14 + $0x70] sm:$0xff] }
 0x3cf   : > { %v1918_v17 = vadd.f32 %v1917_v26, %v1916_v28  ;;  %v1267_v4 = vpop.xlane.xlu0 %1266  ;;  %v1309_v13 = vpop.xlane.xlu1 %1308 }
 0x3d0   : > { %v1268_v5 = vcvt.f32.s32 %v1267_v4  ;;  %v1951_v30 = vadd.f32 %v1950_v15, %v1949_v27  ;;  %vm1353_vm9 = vcmp.eq.s32.totalorder %v1285_v33, %v2719_v48  ;;  %vm1417_vm10 = vcmp.ne.s32.totalorder %v1285_v33, %v2719_v48 }
 0x3d1   : > { %1919 = vadd.xlane.f32.xlu0 %v1918_v17  ;;  %v1310_v47 = vcvt.f32.s32 %v1309_v13  ;;  %v1433_v0 = vsel %vm1417_vm10, 1, %v4329_v59  ;;  %v2241_v42 = vsel %vm1353_vm9, 1.0, %v4278_v9 }
 0x3d2   : > { %v1271_v16 = vadd.s32 %v1270_v23, %v1268_v5  ;;  %1450 = vst.msk [vmem:[%s2970_s18 + $0x58] sm:$0xff] %vm1438_vm4, %v1433_v0  ;;  %v1401_v36 = vmul.f32 %v2241_v42, %v3907_v53 }
 0x3d3   : > { %v1313_v37 = vadd.s32 %v1312_v60, %v1310_v47  ;;  %v1337_v62 = vpop.xlane.xlu1 %1336 }
 0x3d4   : > { %vm1352_vm11 = vcmp.eq.s32.totalorder %v1271_v16, %v2720_v43  ;;  %vm1416_vm12 = vcmp.ne.s32.totalorder %v1271_v16, %v2720_v43  ;;  %v1338_v40 = vcvt.f32.s32 %v1337_v62  ;;  %v1954_v8 = vsel %vm1438_vm4, %v1401_v36, 0.0  ;;  %v1932_v43 = vld [vmem:[#allocation6] sm:$0x1] }
 0x3d5   : > { %v2240_v54 = vsel %vm1352_vm11, 1.0, %v4278_v9  ;;  %v1432_v34 = vsel %vm1416_vm12, 1, %v4329_v59  ;;  %vm1419_vm13 = vcmp.ne.s32.totalorder %v1313_v37, %v2721_v6  ;;  %vm1355_vm14 = vcmp.eq.s32.totalorder %v1313_v37, %v2721_v6 }
 0x3d6   : > { %v1400_v7 = vmul.f32 %v2240_v54, %v3910_v2  ;;  %1449 = vst.msk [vmem:[%s2970_s18 + $0x50] sm:$0xff] %vm1438_vm4, %v1432_v34  ;;  %v1435_v19 = vsel %vm1419_vm13, 1, %v4329_v59  ;;  %v1341_v53 = vadd.s32 %v1340_v45, %v1338_v40  ;;  %v2243_v32 = vsel %vm1355_vm14, 1.0, %v4278_v9 }
 0x3d7   : > { %v1295_v3 = vpop.xlane.xlu0 %1294  ;;  %1452 = vst.msk [vmem:[%s2970_s18 + $0x68] sm:$0xff] %vm1438_vm4, %v1435_v19  ;;  %v1403_v31 = vmul.f32 %v2243_v32, %v3919_v44 }
 0x3d8   : > { %v1952_v55 = vsel %vm1438_vm4, %v1400_v7, 0.0  ;;  %v1296_v2 = vcvt.f32.s32 %v1295_v3  ;;  %vm1421_vm15 = vcmp.ne.s32.totalorder %v1341_v53, %v2722_v1  ;;  %vm1357_vm0 = vcmp.eq.s32.totalorder %v1341_v53, %v2722_v1 }
 0x3d9   : > { %v1953_v20 = vadd.f32 %v1952_v55, %v1951_v30  ;;  %v1437_v49 = vsel %vm1421_vm15, 1, %v4329_v59  ;;  %v2245_v28 = vsel %vm1357_vm0, 1.0, %v4278_v9  ;;  %v1958_v17 = vsel %vm1438_vm4, %v1403_v31, 0.0 }
 0x3da   : > { %v1299_v39 = vadd.s32 %v1298_v50, %v1296_v2  ;;  %1454 = vst.msk [vmem:[%s2970_s18 + $0x78] sm:$0xff] %vm1438_vm4, %v1437_v49  ;;  %v1405_v44 = vmul.f32 %v2245_v28, %v4023_v21 }
 0x3db   : > { %v1955_v46 = vadd.f32 %v1954_v8, %v1953_v20  ;;  %v1323_v51 = vpop.xlane.xlu0 %1322 }
 0x3dc   : > { %vm1354_vm1 = vcmp.eq.s32.totalorder %v1299_v39, %v2723_v18  ;;  %vm1418_vm2 = vcmp.ne.s32.totalorder %v1299_v39, %v2723_v18  ;;  %v1324_v10 = vcvt.f32.s32 %v1323_v51  ;;  %v1962_v60 = vsel %vm1438_vm4, %v1405_v44, 0.0 }
 0x3dd   : > { %v2242_v52 = vsel %vm1354_vm1, 1.0, %v4278_v9  ;;  %v1434_v12 = vsel %vm1418_vm2, 1, %v4329_v59 }
 0x3de   : > { %v1402_v25 = vmul.f32 %v2242_v52, %v3913_v11  ;;  %1451 = vst.msk [vmem:[%s2970_s18 + $0x60] sm:$0xff] %vm1438_vm4, %v1434_v12  ;;  %v1327_v14 = vadd.s32 %v1326_v58, %v1324_v10 }
 0x3e0   : > { %v1956_v29 = vsel %vm1438_vm4, %v1402_v25, 0.0  ;;  %vm1356_vm3 = vcmp.eq.s32.totalorder %v1327_v14, %v2724_v56  ;;  %vm1420_vm5 = vcmp.ne.s32.totalorder %v1327_v14, %v2724_v56 }
 0x3e1   : > { %v1957_v22 = vadd.f32 %v1956_v29, %v1955_v46  ;;  %v2244_v26 = vsel %vm1356_vm3, 1.0, %v4278_v9  ;;  %v1436_v27 = vsel %vm1420_vm5, 1, %v4329_v59 }
 0x3e2   : > { %v1404_v11 = vmul.f32 %v2244_v26, %v3970_v35  ;;  %1453 = vst.msk [vmem:[%s2970_s18 + $0x70] sm:$0xff] %vm1438_vm4, %v1436_v27 }
 0x3e3   : > { %v1959_v15 = vadd.f32 %v1958_v17, %v1957_v22 }
 0x3e4   : > { %v1960_v33 = vsel %vm1438_vm4, %v1404_v11, 0.0  ;;  %vm1930_vm4 = vcmask 0  }
 0x3e5   : > { %v1961_v4 = vadd.f32 %v1960_v33, %v1959_v15 }
 0x3e7   : > { %v1963_v23 = vadd.f32 %v1962_v60, %v1961_v4 }
 0x3e9   : > { %1964 = vadd.xlane.f32.xlu1 %v1963_v23 }
 0x45e   : > { %v1920_v5 = vpop.xlane.xlu0 %1919 }
 0x45f   : > { %v1921_v9 = vrot.slane %v1920_v5, 4 }
 0x461   : > { %v1922_v30 = vadd.f32 %v1921_v9, %v1920_v5 }
 0x463   : > { %v1923_v59 = vrot.slane %v1922_v30, 2 }
 0x465   : > { %v1924_v13 = vadd.f32 %v1923_v59, %v1922_v30 }
 0x467   : > { %v1925_v41 = vrot.slane %v1924_v13, 1 }
 0x469   : > { %v1926_v57 = vadd.f32 %v1925_v41, %v1924_v13 }
 0x46b   : > { %2453 = vpush %v1926_v57 }
 0x476   : > { %v1965_v21 = vpop.xlane.xlu1 %1964 }
 0x477   : > { %v1966_v35 = vrot.slane %v1965_v21, 4 }
 0x479   : > { %v1967_v48 = vadd.f32 %v1966_v35, %v1965_v21 }
 0x47b   : > { %v1968_v47 = vrot.slane %v1967_v48, 2 }
 0x47d   : > { %v1969_v0 = vadd.f32 %v1968_v47, %v1967_v48 }
 0x47f   : > { %v1970_v16 = vrot.slane %v1969_v0, 1 }
 0x481   : > { %v1971_v61 = vadd.f32 %v1970_v16, %v1969_v0 }
 0x483   : > { %2455 = vpush %v1971_v61 }
 0x49c   : > { %s2454_s18 = spop %2453 }
 0x49d   : > { %v1928_v42 = vstv %s2454_s18 }
 0x49e   : > { %v1929_v37 = vadd.f32 %v1928_v42, %v1887_v63 }
 0x4a0   : > { %1931 = vst.msk [vmem:[#allocation4] sm:$0x1] %vm1930_vm4, %v1929_v37 }
 0x4a7   : > { %v1983_v34 = vld [vmem:[#allocation4] sm:$0x1] (!%p2246_p12) }
 0x4a8   : > { %v1984_v7 = vmul.f32 (!%p2246_p12), 0.005, %v1983_v34 }
 0x4aa   : > { %1985 = vst.msk [vmem:[#allocation4] sm:$0x1] (!%p2246_p12), %vm1930_vm4, %v1984_v7 }
 0x4b2   : > { %1979 = sbr.rel (%p2246_p12) target bundleno = 1219 (0x4c3), region = 52 }
 0x4b4   : > { %s2456_s14 = spop %2455 }
 0x4b5   : > { %v1973_v62 = vstv %s2456_s14 }
 0x4b6   : > { %v1974_v45 = vadd.f32 %v1973_v62, %v1932_v43 }
 0x4b8   : > { %1975 = vst.msk [vmem:[#allocation6] sm:$0x1] %vm1930_vm4, %v1974_v45 }
 0x4bf   : > { %v1980_v54 = vld [vmem:[#allocation6] sm:$0x1] }
 0x4c0   : > { %v1981_v36 = vmul.f32 0.005, %v1980_v54 }
 0x4c2   : > { %1982 = vst.msk [vmem:[#allocation6] sm:$0x1] %vm1930_vm4, %v1981_v36 }
 0x4c3 PF: > { %s2848_s29 = smov [#allocation4]   ;;  %s2256_s17 = sshll.u32 %s2924_s13, 11 }
 0x4c4   : > { %s2023_s16 = sshll.u32 %s2848_s29, 4  ;;  %s4094_s25 = scalar_lea.hbm %s4188_s6, %s2256_s17  ;;  %s2024_s16 = int_to_ptr.vmem [resolvable:$true] %s2023_s16 }
 0x4c5   : > { %s2725_s26 = scalar_lea.vmem %s2024_s16, 16  ;;  %s2731_s28 = scalar_lea.vmem %s2024_s16, 32 }
 0x4c6   : > { %p2726_p13 = scmp.ne.s32.totalorder %s2024_s16, %s2725_s26  ;;  %p2732_p3 = scmp.lt.s32.totalorder %s2024_s16, %s2024_s16 }
 0x4c7   : > { %p2733_p4 = scmp.lt.s32.totalorder %s2731_s28, %s2725_s26 }
 0x4c8   : > { %p2727_p0 = pnand %p2726_p13, %p178_p2 }
 0x4c9   : > { %p2734_p7 = por %p2733_p4, %p2732_p3 }
 0x4ca   : > { %p2728_p1 = pneg %p2727_p0 }
 0x4cc   : > { %p2735_p8 = pnand %p2734_p7, %p2728_p1 }
 0x4ce   : > { %2738 = shalt.err (!%p2735_p8)
}
 0x4cf   : > { %s2739_s18 = scalar_lea.hbm %s4190_s8, 16 }
 0x4d0   : > { %p2740_p9 = scmp.ne.s32.totalorder %s4190_s8, %s2739_s18  ;;  %p2745_p12 = scmp.lt.u32.totalorder %s2739_s18, %s4190_s8 }
 0x4d2   : > { %p2741_p10 = pnand %p2740_p9, %p178_p2 }
 0x4d4   : > { %p2742_p11 = pneg %p2741_p10 }
 0x4d6   : > { %p2747_p13 = pnand %p2745_p12, %p2742_p11 }
 0x4d8   : > { %2750 = shalt.err (!%p2747_p13)
}
 0x4d9   : > { %2459 = dma.vmem_to_hbm [thread:$0]  (%p178_p2), %s2024_s16, 16, %s4190_s8, [#allocation5]  }
 0x4da   : > { %s2005_s28 = sshll.u32 %s2972_s11, 4  ;;  %s4119_s23 = scalar_lea.sflag [#allocation3], %s332_s21  ;;  %s4115_s28 = int_to_ptr.vmem [resolvable:$true] %s2005_s28 }
 0x4db   : > { %s2751_s24 = scalar_lea.vmem %s4115_s28, 2048  ;;  %s2849_s18 = smov [#allocation2]  }
 0x4dc   : > { %p2752_p0 = scmp.ne.s32.totalorder %s4115_s28, %s2751_s24  ;;  %s2755_s14 = sshll.u32 %s2849_s18, 4  ;;  %s2756_s14 = int_to_ptr.vmem [resolvable:$false] %s2755_s14 }
 0x4dd   : > { %s2757_s29 = scalar_lea.vmem %s2756_s14, 4096  ;;  %p2758_p4 = scmp.lt.s32.totalorder %s4115_s28, %s2756_s14 }
 0x4de   : > { %p2753_p1 = pnand %p2752_p0, %p2943_p5  ;;  %p2759_p7 = scmp.lt.s32.totalorder %s2757_s29, %s2751_s24 }
 0x4e0   : > { %p2754_p3 = pneg %p2753_p1  ;;  %p2760_p8 = por %p2759_p7, %p2758_p4 }
 0x4e2   : > { %p2761_p9 = pnand %p2760_p8, %p2754_p3 }
 0x4e4   : > { %2764 = shalt.err (!%p2761_p9)
}
 0x4e5   : > { %s2765_s11 = scalar_lea.hbm %s4094_s25, 2048  ;;  %s2769_s17 = scalar_lea.hbm %s4188_s6, 4096 }
 0x4e6   : > { %p2766_p10 = scmp.ne.s32.totalorder %s4094_s25, %s2765_s11  ;;  %p2770_p13 = scmp.lt.u32.totalorder %s4094_s25, %s4188_s6 }
 0x4e7   : > { %p2771_p0 = scmp.lt.u32.totalorder %s2769_s17, %s2765_s11  ;;  %p2773_p3 = scmp.lt.u32.totalorder %s2765_s11, %s4094_s25 }
 0x4e8   : > { %p2767_p11 = pnand %p2766_p10, %p2943_p5 }
 0x4e9   : > { %p2772_p1 = por %p2771_p0, %p2770_p13 }
 0x4ea   : > { %p2768_p12 = pneg %p2767_p11 }
 0x4eb   : > { %p2774_p4 = por %p2773_p3, %p2772_p1 }
 0x4ed   : > { %p2775_p7 = pnand %p2774_p4, %p2768_p12 }
 0x4ef   : > { %2778 = shalt.err (!%p2775_p7)
}
 0x4f0   : > { %s2850_s26 = smov 128   ;;  %s2851_s24 = smov 8  }
 0x4f1   : > { %2457 = dma.vmem_to_hbm [thread:$0]  (%p2943_p5), %s4115_s28, 2048, %s4094_s25, %s4119_s23, %s2850_s26, %s2850_s26, %s2851_s24  }
 0x4f2   : > { %s2852_s18 = smov [#allocation6]  }
 0x4f3   : > { %s2034_s14 = sshll.u32 %s2852_s18, 4  ;;  %s2035_s14 = int_to_ptr.vmem [resolvable:$true] %s2034_s14 }
 0x4f4   : > { %s2779_s29 = scalar_lea.vmem %s2035_s14, 16  ;;  %s2785_s11 = scalar_lea.vmem %s2035_s14, 32 }
 0x4f5   : > { %p2780_p8 = scmp.ne.s32.totalorder %s2035_s14, %s2779_s29  ;;  %p2786_p11 = scmp.lt.s32.totalorder %s2035_s14, %s2035_s14 }
 0x4f6   : > { %p2787_p12 = scmp.lt.s32.totalorder %s2785_s11, %s2779_s29 }
 0x4f7   : > { %p2781_p9 = pnand %p2780_p8, %p178_p2 }
 0x4f8   : > { %p2788_p13 = por %p2787_p12, %p2786_p11 }
 0x4f9   : > { %p2782_p10 = pneg %p2781_p9 }
 0x4fb   : > { %p2789_p0 = pnand %p2788_p13, %p2782_p10 }
 0x4fd   : > { %2792 = shalt.err (!%p2789_p0)
}
 0x4fe   : > { %s2793_s19 = scalar_lea.hbm %s4191_s9, 16 }
 0x4ff   : > { %p2794_p5 = scmp.ne.s32.totalorder %s4191_s9, %s2793_s19  ;;  %p2799_p4 = scmp.lt.u32.totalorder %s2793_s19, %s4191_s9 }
 0x501   : > { %p2795_p1 = pnand %p2794_p5, %p178_p2 }
 0x503   : > { %p2796_p3 = pneg %p2795_p1 }
 0x505   : > { %p2801_p7 = pnand %p2799_p4, %p2796_p3 }
 0x507   : > { %2804 = shalt.err (!%p2801_p7)
}
 0x508   : > { %2461 = dma.vmem_to_hbm [thread:$0]  (%p178_p2), %s2035_s14, 16, %s4191_s9, [#allocation5]  }
 0x509   : > { %2822 = dma.done.wait (%p178_p2), [#allocation5], 32  }
 0x50a   : > { %2824 = vsyncadd (%p178_p2), [#allocation5], 4294967264 }
 0x50b PF: > { %p2475_p8 = scmp.ge.s32.totalorder %s2843_s12, 2  ;;  %s2054_s26 = sand.u32 1, %s2831_s30  }
 0x50c   : > { %s2055_s24 = scalar_lea.sflag [#allocation3], %s2054_s26 }
 0x50d   : > { %p2468_p9 = pnand %p2475_p8, %p2947_p6 }
 0x50f   : > { %2826 = dma.done.wait (!%p2468_p9), %s2055_s24, 2048  }
 0x510   : > { %2828 = vsyncadd (!%p2468_p9), %s2055_s24, 4294965248  ;;  %s4340_s18 = sld [smem:[#allocation9_spill]]  ;;  %s4341_s11 = sld [smem:[#allocation10_spill]] }
 0x511   : > { %p21_p10 = scmp.ge.s32.totalorder %s2928_s15, 4   ;;  %s4342_s30 = smov %s2835_s10 }
 0x512   : > { %s4344_s12 = smov %s2928_s15 }
 0x513   :  { %23 = sbr.rel (!%p21_p10) target bundleno = 4 (0x4), region = 118 }
 0x516   : > { %s4343_s10 = smov %s4340_s18 }
 0x51a   :  { %2068 = vsyncpa [#allocation3], 1 }
 0x51b   :  { %2070 = vsyncpa [#allocation3 + $0x1], 1 }
 0x51c   :  { %2071 = vsyncpa [#allocation5], 1 }

</bundles_post_ra>
